<compile_context>
chip_gen: v6e
topology: v6e:2x2x1
jax: 0.10.0
libtpu: 0.0.40
codegen_flags: <defaults>
</compile_context>

<pallas_src>
import math
import numpy as np
import jax
import jax.numpy as jnp
from jax import lax
from jax.experimental import pallas as pl
from jax.experimental.pallas import tpu as pltpu


# ----------------------------- Pallas conv ----------------------------------
def conv2d_pallas(x_nchw, weight_oihw, bias, stride, padding):
    """Conv2d (NCHW in / NCHW out) as a fused-im2col matmul Pallas kernel."""
    N, C_in, H, W = x_nchw.shape
    C_out, _, kh, kw = weight_oihw.shape
    H_out = (H + 2 * padding - kh) // stride + 1
    W_out = (W + 2 * padding - kw) // stride + 1
    Hp, Wp = H + 2 * padding, W + 2 * padding
    C_out_pad = ((C_out + 127) // 128) * 128     # lane-dense output stores

    # --- prologue: single layout pass, bf16 for HBM/DMA/MXU efficiency ------
    x = jnp.transpose(x_nchw, (0, 2, 3, 1)).astype(jnp.bfloat16)       # NHWC
    xp = jnp.pad(x, ((0, 0), (padding, padding), (padding, padding), (0, 0)))
    # weight (O, I, kh, kw) -> (kh, kw, I, O_pad) bf16, matching tap order
    w = jnp.transpose(weight_oihw, (2, 3, 1, 0))
    w = jnp.pad(w, ((0, 0), (0, 0), (0, 0), (0, C_out_pad - C_out)))
    w = w.astype(jnp.bfloat16)
    b = jnp.pad(bias.astype(jnp.float32),
                (0, C_out_pad - C_out)).reshape(1, C_out_pad)

    def kernel(x_ref, w_ref, b_ref, o_ref):
        # x_ref: (Hp, Wp, C_in)            bf16  whole padded image, one batch
        # w_ref: (kw, C_in, C_out_pad)     bf16  one kernel-row of taps
        # b_ref: (1, C_out_pad)            f32
        # o_ref: (H_out, W_out, C_out_pad) f32   resident accumulator
        dh = pl.program_id(1)

        @pl.when(dh == 0)
        def _init():
            o_ref[...] = jnp.broadcast_to(
                b_ref[...].reshape(1, 1, C_out_pad),
                (H_out, W_out, C_out_pad))

        # Rows needed for this tap-row offset (dynamic start on the major dim).
        if stride == 1:
            rows = x_ref[pl.ds(dh, H_out), :, :]            # (H_out, Wp, C_in)
        else:
            rows = x_ref[pl.ds(dh, (H_out - 1) * stride + 1), :, :]
            rows = rows[::stride]                           # (H_out, Wp, C_in)

        acc = jnp.zeros((H_out * W_out, C_out_pad), jnp.float32)
        for dw in range(kw):                                # static unroll
            if stride == 1:
                win = rows[:, dw:dw + W_out, :]             # static slice
            else:
                win = rows[:, dw:dw + (W_out - 1) * stride + 1:stride, :]
            acc = acc + jnp.dot(win.reshape(H_out * W_out, C_in), w_ref[dw],
                                preferred_element_type=jnp.float32)
        o_ref[...] += acc.reshape(H_out, W_out, C_out_pad)

    flops = 2 * N * H_out * W_out * kh * kw * C_in * C_out_pad
    bytes_accessed = (xp.size * 2 + w.size * 2 + b.size * 4
                      + N * H_out * W_out * C_out_pad * 4)

    out = pl.pallas_call(
        kernel,
        out_shape=jax.ShapeDtypeStruct((N, H_out, W_out, C_out_pad),
                                       jnp.float32),
        grid_spec=pltpu.PrefetchScalarGridSpec(
            num_scalar_prefetch=0,
            grid=(N, kh),
            in_specs=[
                pl.BlockSpec((None, Hp, Wp, C_in),
                             lambda n, t: (n, 0, 0, 0)),
                pl.BlockSpec((None, kw, C_in, C_out_pad),
                             lambda n, t: (t, 0, 0, 0)),
                pl.BlockSpec((1, C_out_pad), lambda n, t: (0, 0)),
            ],
            out_specs=pl.BlockSpec((None, H_out, W_out, C_out_pad),
                                   lambda n, t: (n, 0, 0, 0)),
        ),
        compiler_params=pltpu.CompilerParams(
            dimension_semantics=("parallel", "arbitrary")),
        cost_estimate=pl.CostEstimate(flops=flops, transcendentals=0,
                                      bytes_accessed=bytes_accessed),
    )(xp, w, b)

    # epilogue: drop channel padding, back to NCHW (single layout op)
    return jnp.transpose(out[..., :C_out], (0, 3, 1, 2))


# -------------------------- DNAS Conv2d module -------------------------------
def _calc_seg_list(planes, n_seg, seg_sz):
    seg_sz_num = planes + n_seg - n_seg * seg_sz
    seg_sub_sz_num = n_seg - seg_sz_num
    seg_list = [seg_sz] * seg_sz_num + [seg_sz - 1] * seg_sub_sz_num
    return [sum(seg_list[:i + 1]) for i in range(n_seg)]


class DNASConv2d:
    """JAX/Pallas port of utils/DNAS.py::Conv2d (split_type='fix_gp_number')."""

    def __init__(self, in_planes, out_planes, kernel_size, stride, padding,
                 bias, n_param, key):
        self.in_planes = in_planes
        self.out_planes = out_planes
        self.kernel_size = kernel_size
        self.stride = stride
        self.padding = padding

        # deterministic parameter init (PyTorch-like kaiming-uniform bounds)
        kw_key, kb_key = jax.random.split(key)
        fan_in = in_planes * kernel_size * kernel_size
        bound = 1.0 / math.sqrt(fan_in)
        self.weight = jax.random.uniform(
            kw_key, (out_planes, in_planes, kernel_size, kernel_size),
            minval=-bound, maxval=bound, dtype=jnp.float32)
        self.bias = (jax.random.uniform(kb_key, (out_planes,), minval=-bound,
                                        maxval=bound, dtype=jnp.float32)
                     if bias else jnp.zeros((out_planes,), jnp.float32))

        # dcfg: split_type == 'fix_gp_number' (TYPE_A), dcfg.n_param groups
        in_n_seg = n_param
        in_seg_sz = int(np.ceil(in_planes / n_param))
        self.n_seg = n_param
        self.seg_sz = int(np.ceil(out_planes / n_param))
        assert self.out_planes >= self.n_seg
        if in_n_seg <= self.in_planes:
            self.in_plane_list = jnp.asarray(
                _calc_seg_list(in_planes, in_n_seg, in_seg_sz), jnp.float32)
        out_plane_list = _calc_seg_list(out_planes, self.n_seg, self.seg_sz)

        # mask (out_planes, n_seg)
        mask = np.zeros((out_planes, self.n_seg), np.float32)
        for col in range(self.n_seg):
            mask[:out_plane_list[col], col] = 1.0
        self.mask = jnp.asarray(mask)

        # gate: assign_gate(n_seg, state='uniform') -> zeros
        self.gate = jnp.zeros((self.n_seg,), jnp.float32)
        self.out_plane_list = jnp.asarray(out_plane_list, jnp.float32)

    def _gumbel_softmax(self, tau=1.0, noise=False):
        # TODO(synk): noise=True path (gumbel sampling) not exercised here.
        return jax.nn.softmax(self.gate / tau, axis=0)

    def _cnt_flops(self, p_in, p_out, out_size):
        h, w = out_size
        cin_avg = (jnp.float32(self.in_planes) if p_in is None
                   else jnp.dot(p_in, self.in_plane_list))
        cout_avg = jnp.dot(p_out, self.out_plane_list)
        return cin_avg * cout_avg * h * w * self.kernel_size * self.kernel_size

    def forward(self, x, tau=1.0, noise=False, reuse_prob=None, p_in=None):
        y = conv2d_pallas(x, self.weight, self.bias, self.stride, self.padding)
        prob = (self._gumbel_softmax(tau, noise)
                if reuse_prob is None else reuse_prob)
        rmask = jnp.sum(self.mask * prob, axis=1)
        flops = self._cnt_flops(p_in, prob, y.shape[2:])
        return y, rmask, prob, flops


# --------------------------------- main --------------------------------------
if __name__ == "__main__":
    key = jax.random.PRNGKey(0)
    xkey, pkey = jax.random.split(key)

    N, C_in, H, W = 2, 4, 16, 16
    C_out, ksize, stride, padding = 8, 3, 1, 1

    x = jax.random.normal(xkey, (N, C_in, H, W), dtype=jnp.float32)
    module = DNASConv2d(C_in, C_out, ksize, stride, padding,
                        bias=True, n_param=2, key=pkey)

    y, rmask, prob, flops = module.forward(x, tau=1.0, noise=False)
    jax.block_until_ready((y, rmask, prob, flops))

    # sanity check vs XLA conv on the same bf16-rounded operands (the Pallas
    # kernel uses bf16 inputs with f32 accumulation).
    x_bf = x.astype(jnp.bfloat16).astype(jnp.float32)
    w_bf = module.weight.astype(jnp.bfloat16).astype(jnp.float32)
    y_ref = lax.conv_general_dilated(
        x_bf, w_bf, window_strides=(stride, stride),
        padding=[(padding, padding), (padding, padding)],
        dimension_numbers=("NCHW", "OIHW", "NCHW"),
    ) + module.bias[None, :, None, None]
    assert y.shape == (N, C_out, H, W)
    assert jnp.allclose(y, y_ref, atol=2e-3, rtol=2e-3)
    assert rmask.shape == (C_out,) and prob.shape == (2,)

    print("KERNEL_OK")
</pallas_src>

<mosaic_0001>
module attributes {stable_mosaic.version = 11 : i64} {
  func.func @kernel(%arg0: i32, %arg1: i32, %arg2: memref<1x18x18x4xbf16, #tpu.memory_space<vmem>>, %arg3: memref<1x3x4x128xbf16, #tpu.memory_space<vmem>>, %arg4: memref<1x128xf32, #tpu.memory_space<vmem>>, %arg5: memref<1x16x16x128xf32, #tpu.memory_space<vmem>>) attributes {dimension_semantics = [#tpu.dimension_semantics<parallel>, #tpu.dimension_semantics<arbitrary>], iteration_bounds = array<i64: 2, 3>, scalar_prefetch = 0 : i64, scratch_operands = 0 : i64, tpu.core_type = #tpu.core_type<tc>, window_params = [{transform_indices = @transform_0, window_bounds = array<i64: 1, 18, 18, 4>}, {transform_indices = @transform_1, window_bounds = array<i64: 1, 3, 4, 128>}, {pipeline_mode = #tpu.pipeline_mode<synchronous>, transform_indices = @transform_2, window_bounds = array<i64: 1, 128>}, {transform_indices = @transform_3, window_bounds = array<i64: 1, 16, 16, 128>}]} {
    %c0_i32 = arith.constant 0 : i32
    %0 = arith.cmpi eq, %arg1, %c0_i32 : i32
    %1 = arith.extui %0 : i1 to i32
    %c0_i32_0 = arith.constant 0 : i32
    %2 = arith.cmpi ne, %1, %c0_i32_0 : i32
    scf.if %2 {
      %c0_24 = arith.constant 0 : index
      %c0_25 = arith.constant 0 : index
      %32 = vector.load %arg4[%c0_24, %c0_25] : memref<1x128xf32, #tpu.memory_space<vmem>>, vector<1x128xf32>
      %33 = vector.shape_cast %32 : vector<1x128xf32> to vector<1x1x128xf32>
      %34 = vector.shape_cast %33 : vector<1x1x128xf32> to vector<1x1x128xf32>
      %35 = vector.broadcast %34 : vector<1x1x128xf32> to vector<16x16x128xf32>
      %c0_26 = arith.constant 0 : index
      %c0_27 = arith.constant 0 : index
      %c0_28 = arith.constant 0 : index
      %c0_29 = arith.constant 0 : index
      %36 = vector.load %arg5[%c0_26, %c0_27, %c0_28, %c0_29] : memref<1x16x16x128xf32, #tpu.memory_space<vmem>>, vector<1x16x16x128xf32>
      %37 = vector.shape_cast %36 : vector<1x16x16x128xf32> to vector<16x16x128xf32>
      %38 = vector.shape_cast %35 : vector<16x16x128xf32> to vector<1x16x16x128xf32>
      tpu.vector_store %arg5[%c0_26, %c0_27, %c0_28, %c0_29], %38 {strides = array<i32>} : memref<1x16x16x128xf32, #tpu.memory_space<vmem>>, vector<1x16x16x128xf32>,
    } else {
    }
    %c0 = arith.constant 0 : index
    %3 = arith.index_cast %arg1 : i32 to index
    %c0_1 = arith.constant 0 : index
    %c0_2 = arith.constant 0 : index
    %4 = vector.load %arg2[%c0, %3, %c0_1, %c0_2] : memref<1x18x18x4xbf16, #tpu.memory_space<vmem>>, vector<1x16x18x4xbf16>
    %5 = vector.shape_cast %4 : vector<1x16x18x4xbf16> to vector<16x18x4xbf16>
    %cst = arith.constant 0.000000e+00 : f32
    %6 = vector.broadcast %cst : f32 to vector<256x128xf32>
    %7 = vector.extract_strided_slice %5 {offsets = [0, 0, 0], sizes = [16, 16, 4], strides = [1, 1, 1]} : vector<16x18x4xbf16> to vector<16x16x4xbf16>
    %8 = vector.shape_cast %7 : vector<16x16x4xbf16> to vector<256x4xbf16>
    %c0_3 = arith.constant 0 : index
    %c0_4 = arith.constant 0 : index
    %c0_5 = arith.constant 0 : index
    %c0_6 = arith.constant 0 : index
    %9 = vector.load %arg3[%c0_3, %c0_4, %c0_5, %c0_6] : memref<1x3x4x128xbf16, #tpu.memory_space<vmem>>, vector<1x1x4x128xbf16>
    %10 = vector.shape_cast %9 : vector<1x1x4x128xbf16> to vector<4x128xbf16>
    %cst_7 = arith.constant dense<0.000000e+00> : vector<256x128xf32>
    %11 = tpu.matmul %8, %10, %cst_7 {dimension_numbers = #tpu.dot_dimension_numbers<[1], [0], [0], [1], [0, 0, 1, 1], [], []>} : vector<256x4xbf16>, vector<4x128xbf16>, vector<256x128xf32> -> vector<256x128xf32>
    %12 = arith.addf %6, %11 : vector<256x128xf32>
    %13 = vector.extract_strided_slice %5 {offsets = [0, 1, 0], sizes = [16, 16, 4], strides = [1, 1, 1]} : vector<16x18x4xbf16> to vector<16x16x4xbf16>
    %14 = vector.shape_cast %13 : vector<16x16x4xbf16> to vector<256x4xbf16>
    %c0_8 = arith.constant 0 : index
    %c1 = arith.constant 1 : index
    %c0_9 = arith.constant 0 : index
    %c0_10 = arith.constant 0 : index
    %15 = vector.load %arg3[%c0_8, %c1, %c0_9, %c0_10] : memref<1x3x4x128xbf16, #tpu.memory_space<vmem>>, vector<1x1x4x128xbf16>
    %16 = vector.shape_cast %15 : vector<1x1x4x128xbf16> to vector<4x128xbf16>
    %cst_11 = arith.constant dense<0.000000e+00> : vector<256x128xf32>
    %17 = tpu.matmul %14, %16, %cst_11 {dimension_numbers = #tpu.dot_dimension_numbers<[1], [0], [0], [1], [0, 0, 1, 1], [], []>} : vector<256x4xbf16>, vector<4x128xbf16>, vector<256x128xf32> -> vector<256x128xf32>
    %18 = arith.addf %12, %17 : vector<256x128xf32>
    %19 = vector.extract_strided_slice %5 {offsets = [0, 2, 0], sizes = [16, 16, 4], strides = [1, 1, 1]} : vector<16x18x4xbf16> to vector<16x16x4xbf16>
    %20 = vector.shape_cast %19 : vector<16x16x4xbf16> to vector<256x4xbf16>
    %c0_12 = arith.constant 0 : index
    %c2 = arith.constant 2 : index
    %c0_13 = arith.constant 0 : index
    %c0_14 = arith.constant 0 : index
    %21 = vector.load %arg3[%c0_12, %c2, %c0_13, %c0_14] : memref<1x3x4x128xbf16, #tpu.memory_space<vmem>>, vector<1x1x4x128xbf16>
    %22 = vector.shape_cast %21 : vector<1x1x4x128xbf16> to vector<4x128xbf16>
    %cst_15 = arith.constant dense<0.000000e+00> : vector<256x128xf32>
    %23 = tpu.matmul %20, %22, %cst_15 {dimension_numbers = #tpu.dot_dimension_numbers<[1], [0], [0], [1], [0, 0, 1, 1], [], []>} : vector<256x4xbf16>, vector<4x128xbf16>, vector<256x128xf32> -> vector<256x128xf32>
    %24 = arith.addf %18, %23 : vector<256x128xf32>
    %c0_16 = arith.constant 0 : index
    %c0_17 = arith.constant 0 : index
    %c0_18 = arith.constant 0 : index
    %c0_19 = arith.constant 0 : index
    %25 = vector.load %arg5[%c0_16, %c0_17, %c0_18, %c0_19] : memref<1x16x16x128xf32, #tpu.memory_space<vmem>>, vector<1x16x16x128xf32>
    %26 = vector.shape_cast %25 : vector<1x16x16x128xf32> to vector<16x16x128xf32>
    %27 = vector.shape_cast %24 : vector<256x128xf32> to vector<16x16x128xf32>
    %28 = arith.addf %26, %27 : vector<16x16x128xf32>
    %c0_20 = arith.constant 0 : index
    %c0_21 = arith.constant 0 : index
    %c0_22 = arith.constant 0 : index
    %c0_23 = arith.constant 0 : index
    %29 = vector.load %arg5[%c0_20, %c0_21, %c0_22, %c0_23] : memref<1x16x16x128xf32, #tpu.memory_space<vmem>>, vector<1x16x16x128xf32>
    %30 = vector.shape_cast %29 : vector<1x16x16x128xf32> to vector<16x16x128xf32>
    %31 = vector.shape_cast %28 : vector<16x16x128xf32> to vector<1x16x16x128xf32>
    tpu.vector_store %arg5[%c0_20, %c0_21, %c0_22, %c0_23], %31 {strides = array<i32>} : memref<1x16x16x128xf32, #tpu.memory_space<vmem>>, vector<1x16x16x128xf32>,
    return
  }
  func.func @transform_0(%arg0: i32, %arg1: i32) -> (i32, i32, i32, i32) {
    %c0_i32 = arith.constant 0 : i32
    %c0_i32_0 = arith.constant 0 : i32
    %c0_i32_1 = arith.constant 0 : i32
    %c0_i32_2 = arith.constant 0 : i32
    return %arg0, %c0_i32, %c0_i32_0, %c0_i32_1 : i32, i32, i32, i32
  }
  func.func @transform_1(%arg0: i32, %arg1: i32) -> (i32, i32, i32, i32) {
    %c0_i32 = arith.constant 0 : i32
    %c0_i32_0 = arith.constant 0 : i32
    %c0_i32_1 = arith.constant 0 : i32
    %c0_i32_2 = arith.constant 0 : i32
    return %arg1, %c0_i32, %c0_i32_0, %c0_i32_1 : i32, i32, i32, i32
  }
  func.func @transform_2(%arg0: i32, %arg1: i32) -> (i32, i32) {
    %c0_i32 = arith.constant 0 : i32
    %c0_i32_0 = arith.constant 0 : i32
    %c0_i32_1 = arith.constant 0 : i32
    return %c0_i32, %c0_i32_0 : i32, i32
  }
  func.func @transform_3(%arg0: i32, %arg1: i32) -> (i32, i32, i32, i32) {
    %c0_i32 = arith.constant 0 : i32
    %c0_i32_0 = arith.constant 0 : i32
    %c0_i32_1 = arith.constant 0 : i32
    %c0_i32_2 = arith.constant 0 : i32
    return %arg0, %c0_i32, %c0_i32_0, %c0_i32_1 : i32, i32, i32, i32
  }
}

</mosaic_0001>

<bundles_post_ra>
// kernel: tpu_custom_call.1
= control target key start
LH: loop header
LB: loop body
LE: loop exit
PB: predicated region body
PF: predicated region fallthrough
CT: control target
= control target key end

     0   :  { %8 = vsyncpa [#allocation3], 0  ;;  %s3222_s0 = inlined_call_operand.vmem [shape: bf16[2,18,18,4], index: 0, kind: input, shape index: {}]   ;;  %s3223_s1 = inlined_call_operand.vmem [shape: bf16[3,3,4,128], index: 1, kind: input, shape index: {}]   ;;  %s3224_s2 = inlined_call_operand.vmem [shape: f32[1,128], index: 2, kind: input, shape index: {}]   ;;  %s3225_s3 = inlined_call_operand.hbm [shape: f32[2,16,16,128], index: 3, kind: output, shape index: {}]  }
   0x1   :  { %10 = vsyncpa [#allocation3 + $0x1], 0  ;;  %s2361_s12 = smov 0   ;;  %s2363_s13 = smov 0  }
   0x2   :  { %s2365_s14 = smov 0   ;;  %s2367_s15 = smov 0  }
   0x3   :  { %s2369_s16 = smov 0   ;;  %s2371_s17 = smov 0  }
   0x4   :  { %s2373_s18 = smov 0   ;;  %s2375_s19 = smov 0  }
   0x5 LB: > { %s1862_s20 = sadd.s32 4294967295, %s2336_s19   ;;  %s1863_s21 = sadd.s32 4294967294, %s2336_s19   ;;  %s2336_s19 = sphi %s2375_s19, %s16_s19   ;;  %s2332_s18 = sphi %s2373_s18, %s3273_s18   ;;  %s2328_s17 = sphi %s2371_s17, %s3272_s17   ;;  %s2324_s16 = sphi %s2369_s16, %s3271_s16   ;;  %s2320_s15 = sphi %s2367_s15, %s3270_s15   ;;  %s2316_s14 = sphi %s2365_s14, %s3269_s14   ;;  %s2312_s13 = sphi %s2363_s13, %s3268_s13   ;;  %s2308_s12 = sphi %s2361_s12, %s3267_s12  }
   0x6   : > { %s25_s22 = sadd.s32 1, %s2328_s17  ;;  %s28_s23 = sadd.s32 1, %s2332_s18 }
   0x7   : > { %p26_p0 = scmp.ge.s32.totalorder %s25_s22, 3  ;;  %p118_p1 = scmp.ne.s32.totalorder %s2316_s14, %s2312_s13 }
   0x8   : > { %p119_p2 = scmp.eq.s32.totalorder %s1862_s20, 5  ;;  %p124_p4 = scmp.ne.s32.totalorder %s2312_s13, %s2308_s12 }
   0x9   : > { %s3275_s22 = smov (%p26_p0, %s25_s22), 0  ;;  %s3277_s23 = smov (!%p26_p0, %s28_s23), %s2332_s18 }
   0xa   : > { %p2410_p3 = por %p119_p2, %p118_p1  ;;  %p30_p5 = scmp.ge.s32.totalorder %s3277_s23, 2 }
   0xb   : > { %p125_p6 = scmp.eq.s32.totalorder %s1863_s21, 5  ;;  %p1866_p7 = scmp.ge.s32.totalorder %s2336_s19, 1 }
   0xc   : > { %p162_p8 = scmp.lt.s32.totalorder %s2336_s19, 7  ;;  %s3279_s23 = smov (%p30_p5, %s3277_s23), 0 }
   0xd   : > { %p2420_p9 = por %p125_p6, %p124_p4  ;;  %s105_s26 = ssub.s32 %s2332_s18, %s3279_s23 }
   0xe   : > { %p163_p10 = pnand %p1866_p7, %p162_p8  ;;  %s108_s27 = sadd.s32 1, %s2316_s14 }
   0xf   : > { %p106_p11 = scmp.eq.s32.totalorder %s105_s26, 0 }
  0x10   : > { %166 = sbr.rel (%p163_p10) target bundleno = 411 (0x19b), region = 32 }
  0x11   : > { %s2428_s28 = scalar_select %p106_p11, %s2316_s14, %s108_s27  }
  0x15   : > { %s3226_s29 = sand.u32 1, %s2312_s13   ;;  %p191_p12 = scmp.lt.s32.totalorder %s2324_s16, 1 }
  0x16   : > { %s1867_s30 = sshll.u32 %s3226_s29, 8  ;;  %p196_p13 = scmp.lt.s32.totalorder %s2320_s15, 2 }
  0x17   : > { %s192_s4 = scalar_select %p191_p12, %s2324_s16, 1 }
  0x18   : > { %s197_s5 = scalar_select %p196_p13, %s2320_s15, 2 }
  0x19   : > { %s2153_s6 = smul.u32 216, %s192_s4  ;;  %s2447_s26 = scalar_lea.vmem [#allocation2], %s1867_s30 }
  0x1a   : > { %s2154_s7 = smul.u32 6, %s197_s5  ;;  %p1870_p0 = scmp.ne.s32.totalorder %s2320_s15, 0 }
  0x1b   : > { %s2440_s10 = scalar_lea.vmem %s3222_s0, %s2153_s6 }
  0x1c   : > { %s2445_s21 = scalar_lea.vmem %s3223_s1, %s2154_s7  ;;  %205 = sbr.rel (%p1870_p0) target bundleno = 50 (0x32), region = 36 }
  0x21   : > { %v1871_v0 = vld [vmem:[%s3224_s2] ss:$0 sm:$0xff] }
  0x22   : > { %213 = vst [vmem:[%s2447_s26] sm:$0xff] %v1871_v0  ;;  %214 = vst [vmem:[%s2447_s26 + $0x8] sm:$0xff] %v1871_v0 }
  0x23   : > { %215 = vst [vmem:[%s2447_s26 + $0x10] sm:$0xff] %v1871_v0  ;;  %216 = vst [vmem:[%s2447_s26 + $0x18] sm:$0xff] %v1871_v0 }
  0x24   : > { %217 = vst [vmem:[%s2447_s26 + $0x20] sm:$0xff] %v1871_v0  ;;  %218 = vst [vmem:[%s2447_s26 + $0x28] sm:$0xff] %v1871_v0 }
  0x25   : > { %219 = vst [vmem:[%s2447_s26 + $0x30] sm:$0xff] %v1871_v0  ;;  %220 = vst [vmem:[%s2447_s26 + $0x38] sm:$0xff] %v1871_v0 }
  0x26   : > { %221 = vst [vmem:[%s2447_s26 + $0x40] sm:$0xff] %v1871_v0  ;;  %222 = vst [vmem:[%s2447_s26 + $0x48] sm:$0xff] %v1871_v0 }
  0x27   : > { %223 = vst [vmem:[%s2447_s26 + $0x50] sm:$0xff] %v1871_v0  ;;  %224 = vst [vmem:[%s2447_s26 + $0x58] sm:$0xff] %v1871_v0 }
  0x28   : > { %225 = vst [vmem:[%s2447_s26 + $0x60] sm:$0xff] %v1871_v0  ;;  %226 = vst [vmem:[%s2447_s26 + $0x68] sm:$0xff] %v1871_v0 }
  0x29   : > { %227 = vst [vmem:[%s2447_s26 + $0x70] sm:$0xff] %v1871_v0  ;;  %228 = vst [vmem:[%s2447_s26 + $0x78] sm:$0xff] %v1871_v0 }
  0x2a   : > { %229 = vst [vmem:[%s2447_s26 + $0x80] sm:$0xff] %v1871_v0  ;;  %230 = vst [vmem:[%s2447_s26 + $0x88] sm:$0xff] %v1871_v0 }
  0x2b   : > { %231 = vst [vmem:[%s2447_s26 + $0x90] sm:$0xff] %v1871_v0  ;;  %232 = vst [vmem:[%s2447_s26 + $0x98] sm:$0xff] %v1871_v0 }
  0x2c   : > { %233 = vst [vmem:[%s2447_s26 + $0xa0] sm:$0xff] %v1871_v0  ;;  %234 = vst [vmem:[%s2447_s26 + $0xa8] sm:$0xff] %v1871_v0 }
  0x2d   : > { %235 = vst [vmem:[%s2447_s26 + $0xb0] sm:$0xff] %v1871_v0  ;;  %236 = vst [vmem:[%s2447_s26 + $0xb8] sm:$0xff] %v1871_v0 }
  0x2e   : > { %237 = vst [vmem:[%s2447_s26 + $0xc0] sm:$0xff] %v1871_v0  ;;  %238 = vst [vmem:[%s2447_s26 + $0xc8] sm:$0xff] %v1871_v0 }
  0x2f   : > { %239 = vst [vmem:[%s2447_s26 + $0xd0] sm:$0xff] %v1871_v0  ;;  %240 = vst [vmem:[%s2447_s26 + $0xd8] sm:$0xff] %v1871_v0 }
  0x30   : > { %241 = vst [vmem:[%s2447_s26 + $0xe0] sm:$0xff] %v1871_v0  ;;  %242 = vst [vmem:[%s2447_s26 + $0xe8] sm:$0xff] %v1871_v0 }
  0x31   : > { %243 = vst [vmem:[%s2447_s26 + $0xf0] sm:$0xff] %v1871_v0  ;;  %244 = vst [vmem:[%s2447_s26 + $0xf8] sm:$0xff] %v1871_v0 }
  0x32 PF: > { %v1873_v1 = vld [vmem:[%s2445_s21 + $0x2] sm:$0x3]  ;;  %vm783_vm0 = vcmask 1041408   ;;  %s1992_s29 = smul.u32 12, %s2320_s15  ;;  %vm297_vm1 = vsmask.f32 3328 }
  0x33   : > { %2150 = vmatprep.subr.msk.bf16.mxu1 %vm783_vm0, %v1873_v1  ;;  %2149 = vmatprep.subr.msk.bf16.mxu0 %vm783_vm0, %v1873_v1  ;;  %v785_v2 = vsel %vm783_vm0, %v1873_v1, 0  ;;  %v296_v3 = vld [vmem:[%s2445_s21] sm:$0x3]  ;;  %vm298_vm2 = vsmask.f32 7440  ;;  %vm734_vm3 = vcmask 31744  }
  0x34   : > { %2148 = vmatpush3.bf16.msra.mxu1 %v785_v2  ;;  %2046 = vmatpush3.bf16.msra.mxu0 %v785_v2  ;;  %s2492_s30 = scalar_lea.vmem %s2440_s10, %s1992_s29  ;;  %v2495_v4 = vsel %vm783_vm0, %v296_v3, 0  ;;  %v2498_v5 = vld [vmem:[%s2445_s21 + $0x4] sm:$0x3]  ;;  %vm2540_vm4 = vmor %vm297_vm1, %vm298_vm2  ;;  %vm1256_vm5 = vcmask 1042432   ;;  %vm1257_vm6 = vcmask 1046532   ;;  %s1993_s15 = sshll.u32 %s2324_s16, 12 }
  0x35   : > { %v2501_v6 = vld [vmem:[%s2492_s30] sm:$0xf]  ;;  %v2504_v7 = vld [vmem:[%s2492_s30 + $0x4] sm:$0xf]  ;;  %v2507_v8 = vld [vmem:[%s2492_s30 + $0x8] sm:$0x1]  ;;  %2151 = vmatprep.subr.msk.bf16.mxu1 %vm783_vm0, %v296_v3  ;;  %2152 = vmatprep.subr.msk.bf16.mxu0 %vm783_vm0, %v2498_v5  ;;  %s3163_s7 = scalar_lea.hbm %s3225_s3, %s1993_s15 }
  0x36   : > { %v301_v9 = vshrl.u32 %v2501_v6, 16  ;;  %v304_v10 = vshll.u32 %v2501_v6, 16  ;;  %v310_v11 = vshll.u32 %v2504_v7, 16  ;;  %v314_v12 = vshrl.u32 %v2504_v7, 16  ;;  %v2517_v13 = vld [vmem:[%s2492_s30 + $0x60] sm:$0xf]  ;;  %vm2812_vm7 = vmor %vm1256_vm5, %vm1257_vm6 }
  0x37   : > { %v320_v14 = vshll.u32 %v2507_v8, 16  ;;  %v2522_v16 = vld [vmem:[%s2492_s30 + $0x64] sm:$0xf]  ;;  %v2525_v17 = vld [vmem:[%s2492_s30 + $0x68] sm:$0x1]  ;;  %v493_v23 = vshrl.u32 %v2517_v13, 16 }
  0x38   : > { %v303_v18 = vrot.slane %v301_v9, 4  ;;  %v306_v19 = vrot.slane %v304_v10, 5  ;;  %v312_v20 = vrot.slane %v310_v11, 5  ;;  %v316_v21 = vrot.slane %v314_v12, 4  ;;  %v2533_v30 = vld [vmem:[%s2492_s30 + $0xc] sm:$0xf] }
  0x39   : > { %v322_v22 = vrot.slane %v320_v14, 5  ;;  %v496_v24 = vshll.u32 %v2517_v13, 16  ;;  %v502_v25 = vshll.u32 %v2522_v16, 16  ;;  %v506_v28 = vshrl.u32 %v2522_v16, 16  ;;  %v2536_v31 = vld [vmem:[%s2492_s30 + $0x10] sm:$0xf] }
  0x3a   : > { %v307_v26 = vor.u32 %v306_v19, %v303_v18  ;;  %v317_v27 = vor.u32 %v316_v21, %v312_v20  ;;  %v512_v29 = vshll.u32 %v2525_v17, 16  ;;  %v495_v33 = vrot.slane %v493_v23, 4  ;;  %v2547_v42 = vld [vmem:[%s2492_s30 + $0x14] sm:$0x1]  ;;  %v2558_v54 = vld [vmem:[%s2492_s30 + $0x6c] sm:$0xf] }
  0x3b   : > { %v498_v34 = vrot.slane %v496_v24, 5  ;;  %v504_v35 = vrot.slane %v502_v25, 5  ;;  %v508_v39 = vrot.slane %v506_v28, 4  ;;  %v325_v43 = vshrl.u32 %v2533_v30, 16  ;;  %3243 = vst [vmem:[#allocation5_spill] sm:$0xff] %v2558_v54  ;;  %s1775_s4 = sshll.u32 %s2447_s26, 4  ;;  %s3165_s4 = int_to_ptr.vmem [resolvable:$true] %s1775_s4 }
  0x3c   : > { %v308_v37 = vrot.slane %v307_v26, 4  ;;  %v318_v38 = vrot.slane %v317_v27, 4  ;;  %v514_v40 = vrot.slane %v512_v29, 5  ;;  %v328_v44 = vshll.u32 %v2533_v30, 16  ;;  %v2562_v59 = vld [vmem:[%s2492_s30 + $0x70] sm:$0xf] }
  0x3d   : > { %v499_v41 = vor.u32 %v498_v34, %v495_v33  ;;  %v334_v45 = vshll.u32 %v2536_v31, 16  ;;  %v509_v48 = vor.u32 %v508_v39, %v504_v35  ;;  %v338_v49 = vshrl.u32 %v2536_v31, 16  ;;  %v2570_v0 = vld [vmem:[%s2492_s30 + $0x74] sm:$0x1]  ;;  %v2578_v18 = vld [vmem:[%s2492_s30 + $0x18] sm:$0xf] }
  0x3e   : > { %v313_v46 = vsel %vm2540_vm4, %v308_v37, %v312_v20  ;;  %v323_v47 = vsel %vm2540_vm4, %v318_v38, %v322_v22  ;;  %v327_v52 = vrot.slane %v325_v43, 4  ;;  %v330_v53 = vrot.slane %v328_v44, 5  ;;  %3244 = vst [vmem:[#allocation6_spill] sm:$0xff] %v2570_v0  ;;  %v2583_v23 = vld [vmem:[%s2492_s30 + $0x1c] sm:$0xf]  ;;  %s3266_s16 = sand.u32 1, %s2312_s13  }
  0x3f   : > { %v1874_v50 = vcombine.low %v313_v46, %v323_v47  ;;  %v500_v51 = vrot.slane %v499_v41, 4  ;;  %v510_v55 = vrot.slane %v509_v48, 4  ;;  %v336_v56 = vrot.slane %v334_v45, 5  ;;  %v2591_v28 = vld [vmem:[%s2492_s30 + $0x20] sm:$0x1]  ;;  %s3171_s8 = scalar_lea.sflag [#allocation3], %s3266_s16 }
  0x40   : > { %v340_v57 = vrot.slane %v338_v49, 4  ;;  %v344_v58 = vshll.u32 %v2547_v42, 16  ;;  %v331_v61 = vor.u32 %v330_v53, %v327_v52  ;;  %v517_v9 = vshrl.u32 %v2558_v54, 16  ;;  %v2597_v37 = vld [vmem:[%s2492_s30 + $0x78] sm:$0xf]  ;;  %s2244_s9 = scalar_lea.vmem %s3165_s4, 4096 }
  0x41   : > { %2047 = vmatprep.mubr.msk.bf16.mxu0 %vm734_vm3, %v1874_v50  ;;  %v505_v60 = vsel %vm2540_vm4, %v500_v51, %v504_v35  ;;  %v515_v1 = vsel %vm2540_vm4, %v510_v55, %v514_v40  ;;  %v520_v12 = vshll.u32 %v2558_v54, 16  ;;  %v526_v14 = vshll.u32 %v2562_v59, 16  ;;  %3245 = vst [vmem:[#allocation7_spill] sm:$0xff] %v2597_v37  ;;  %v2604_v46 = vld [vmem:[%s2492_s30 + $0x7c] sm:$0xf]  ;;  %p2245_p1 = scmp.ne.s32.totalorder %s3165_s4, %s2244_s9  ;;  %s2338_s10 = smov [#allocation2]  }
  0x42   : > { %v341_v2 = vor.u32 %v340_v57, %v336_v56  ;;  %v346_v3 = vrot.slane %v344_v58, 5  ;;  %v1882_v10 = vcombine.low %v505_v60, %v515_v1  ;;  %v332_v11 = vrot.slane %v331_v61, 4  ;;  %v2609_v55 = vld [vmem:[%s2492_s30 + $0x80] sm:$0x1]  ;;  %v2616_v1 = vld [vmem:[%s2492_s30 + $0x24] sm:$0xf] }
  0x43   : > { %v519_v20 = vrot.slane %v517_v9, 4  ;;  %v530_v21 = vshrl.u32 %v2562_v59, 16  ;;  %v536_v22 = vshll.u32 %v2570_v0, 16  ;;  %v522_v25 = vrot.slane %v520_v12, 5  ;;  %3246 = vst [vmem:[#allocation8_spill] sm:$0xff] %v2609_v55  ;;  %p2246_p2 = pnand %p2245_p1, %p2410_p3  ;;  %s2248_s11 = sshll.u32 %s2338_s10, 4  ;;  %s2249_s11 = int_to_ptr.vmem [resolvable:$false] %s2248_s11 }
  0x44   : > { %v342_v19 = vrot.slane %v341_v2, 4  ;;  %2063 = vmatprep.mubr.msk.bf16.mxu1 %vm734_vm3, %v1882_v10  ;;  %v337_v24 = vsel %vm2540_vm4, %v332_v11, %v336_v56  ;;  %v528_v26 = vrot.slane %v526_v14, 5  ;;  %v1470_v27 = vsel %vm783_vm0, %v2498_v5, 0  ;;  %v2622_v11 = vld [vmem:[%s2492_s30 + $0x28] sm:$0xf]  ;;  %s2250_s20 = scalar_lea.vmem %s2249_s11, 8192  ;;  %p2251_p5 = scmp.lt.s32.totalorder %s3165_s4, %s2249_s11 }
  0x45   : > { %v532_v33 = vrot.slane %v530_v21, 4  ;;  %v538_v34 = vrot.slane %v536_v22, 5  ;;  %v349_v35 = vshrl.u32 %v2578_v18, 16  ;;  %v523_v39 = vor.u32 %v522_v25, %v519_v20  ;;  %v2626_v25 = vld [vmem:[%s2492_s30 + $0x2c] sm:$0x1]  ;;  %p2247_p4 = pneg %p2246_p2  ;;  %p2252_p6 = scmp.lt.s32.totalorder %s2250_s20, %s2244_s9 }
  0x46   : > { %v347_v29 = vsel %vm2540_vm4, %v342_v19, %v346_v3  ;;  %v352_v40 = vshll.u32 %v2578_v18, 16  ;;  %v358_v41 = vshll.u32 %v2583_v23, 16  ;;  %v362_v44 = vshrl.u32 %v2583_v23, 16  ;;  %v2765_v15 = vld [vmem:[%s2492_s30 + $0xb0] sm:$0x1] }
  0x47   : > { %v1875_v38 = vcombine.low %v337_v24, %v347_v29  ;;  %v533_v43 = vor.u32 %v532_v33, %v528_v26  ;;  %v351_v5 = vrot.slane %v349_v35, 4  ;;  %v368_v45 = vshll.u32 %v2591_v28, 16  ;;  %v2635_v35 = vld [vmem:[%s2492_s30 + $0x84] sm:$0xf]  ;;  %3249 = vst [vmem:[#allocation11_spill] sm:$0xff] %v2765_v15  ;;  %p2253_p7 = por %p2252_p6, %p2251_p5 }
  0x48   : > { %v524_v47 = vrot.slane %v523_v39, 4  ;;  %v354_v48 = vrot.slane %v352_v40, 5  ;;  %v360_v49 = vrot.slane %v358_v41, 5  ;;  %v541_v50 = vshrl.u32 %v2597_v37, 16 }
  0x49   : > { %2048 = vmatmul.mubr.msk.bf16.vlgmr.msra.gmra.mxu0 %vm734_vm3, %v1875_v38  ;;  %v534_v51 = vrot.slane %v533_v43, 4  ;;  %v364_v52 = vrot.slane %v362_v44, 4  ;;  %v370_v53 = vrot.slane %v368_v45, 5  ;;  %v544_v56 = vshll.u32 %v2597_v37, 16  ;;  %v2641_v43 = vld [vmem:[%s2492_s30 + $0x88] sm:$0xf]  ;;  %p2254_p8 = pnand %p2253_p7, %p2247_p4 }
  0x4a   : > { %2114 = vmatpush3.bf16.msra.mxu0 %v1470_v27  ;;  %v529_v57 = vsel %vm2540_vm4, %v524_v47, %v528_v26  ;;  %v355_v58 = vor.u32 %v354_v48, %v351_v5  ;;  %v543_v60 = vrot.slane %v541_v50, 4  ;;  %v550_v61 = vshll.u32 %v2604_v46, 16  ;;  %v2648_v50 = vld [vmem:[%s2492_s30 + $0x8c] sm:$0x1] }
  0x4b   : > { %v539_v2 = vsel %vm2540_vm4, %v534_v51, %v538_v34  ;;  %v365_v3 = vor.u32 %v364_v52, %v360_v49  ;;  %v546_v9 = vrot.slane %v544_v56, 5  ;;  %v554_v10 = vshrl.u32 %v2604_v46, 16 }
  0x4c   : > { %v1883_v12 = vcombine.low %v529_v57, %v539_v2  ;;  %v356_v14 = vrot.slane %v355_v58, 4  ;;  %v552_v19 = vrot.slane %v550_v61, 5  ;;  %v560_v20 = vshll.u32 %v2609_v55, 16  ;;  %v2655_v58 = vld [vmem:[%s2492_s30 + $0x30] sm:$0xf] }
  0x4d   : > { %v366_v21 = vrot.slane %v365_v3, 4  ;;  %v547_v22 = vor.u32 %v546_v9, %v543_v60  ;;  %v556_v24 = vrot.slane %v554_v10, 4  ;;  %v373_v26 = vshrl.u32 %v2616_v1, 16 }
  0x4e   : > { %2064 = vmatmul.mubr.msk.bf16.vlgmr.msra.gmra.mxu1 %vm734_vm3, %v1883_v12  ;;  %v361_v27 = vsel %vm2540_vm4, %v356_v14, %v360_v49  ;;  %v562_v29 = vrot.slane %v560_v20, 5  ;;  %v376_v33 = vshll.u32 %v2616_v1, 16  ;;  %v382_v34 = vshll.u32 %v2622_v11, 16 }
  0x4f   : > { %2080 = vmatpush3.bf16.msra.mxu1 %v2495_v4  ;;  %v371_v38 = vsel %vm2540_vm4, %v366_v21, %v370_v53  ;;  %v548_v39 = vrot.slane %v547_v22, 4  ;;  %v557_v40 = vor.u32 %v556_v24, %v552_v19  ;;  %v375_v41 = vrot.slane %v373_v26, 4 }
  0x50   : > { %v1876_v5 = vcombine.low %v361_v27, %v371_v38  ;;  %v378_v44 = vrot.slane %v376_v33, 5  ;;  %v384_v45 = vrot.slane %v382_v34, 5  ;;  %v386_v47 = vshrl.u32 %v2622_v11, 16  ;;  %v2669_v33 = vld [vmem:[%s2492_s30 + $0x38] sm:$0x1] }
  0x51   : > { %v553_v48 = vsel %vm2540_vm4, %v548_v39, %v552_v19  ;;  %v558_v49 = vrot.slane %v557_v40, 4  ;;  %v392_v4 = vshll.u32 %v2626_v25, 16  ;;  %v565_v51 = vshrl.u32 %v2635_v35, 16  ;;  %v2661_v19 = vld [vmem:[%s2492_s30 + $0x34] sm:$0xf] }
  0x52   : > { %2051 = vmatprep.mubr.msk.bf16.mxu0 %vm734_vm3, %v1876_v5  ;;  %v379_v52 = vor.u32 %v378_v44, %v375_v41  ;;  %v388_v53 = vrot.slane %v386_v47, 4  ;;  %v568_v56 = vshll.u32 %v2635_v35, 16  ;;  %v574_v57 = vshll.u32 %v2641_v43, 16  ;;  %v2674_v5 = vld [vmem:[%s2492_s30 + $0x90] sm:$0xf] }
  0x53   : > { %v563_v60 = vsel %vm2540_vm4, %v558_v49, %v562_v29  ;;  %v394_v61 = vrot.slane %v392_v4, 5  ;;  %v567_v2 = vrot.slane %v565_v51, 4  ;;  %v578_v3 = vshrl.u32 %v2641_v43, 16  ;;  %v2680_v49 = vld [vmem:[%s2492_s30 + $0x94] sm:$0xf] }
  0x54   : > { %v1884_v9 = vcombine.low %v553_v48, %v563_v60  ;;  %v380_v10 = vrot.slane %v379_v52, 4  ;;  %v389_v12 = vor.u32 %v388_v53, %v384_v45  ;;  %v570_v14 = vrot.slane %v568_v56, 5 }
  0x55   : > { %v576_v20 = vrot.slane %v574_v57, 5  ;;  %v580_v21 = vrot.slane %v578_v3, 4  ;;  %v584_v22 = vshll.u32 %v2648_v50, 16  ;;  %v397_v24 = vshrl.u32 %v2655_v58, 16 }
  0x56   : > { %2067 = vmatprep.mubr.msk.bf16.mxu1 %vm734_vm3, %v1884_v9  ;;  %v385_v26 = vsel %vm2540_vm4, %v380_v10, %v384_v45  ;;  %v390_v27 = vrot.slane %v389_v12, 4  ;;  %v571_v29 = vor.u32 %v570_v14, %v567_v2  ;;  %v400_v34 = vshll.u32 %v2655_v58, 16  ;;  %v2686_v2 = vld [vmem:[%s2492_s30 + $0x98] sm:$0x1]  ;;  %v2695_v14 = vld [vmem:[%s2492_s30 + $0x3c] sm:$0xf] }
  0x57   : > { %v581_v38 = vor.u32 %v580_v21, %v576_v20  ;;  %v586_v39 = vrot.slane %v584_v22, 5  ;;  %v399_v40 = vrot.slane %v397_v24, 4  ;;  %v406_v41 = vshll.u32 %v2661_v19, 16 }
  0x58   : > { %v395_v44 = vsel %vm2540_vm4, %v390_v27, %v394_v61  ;;  %v572_v47 = vrot.slane %v571_v29, 4  ;;  %v402_v48 = vrot.slane %v400_v34, 5  ;;  %v410_v45 = vshrl.u32 %v2661_v19, 16 }
  0x59   : > { %v1877_v4 = vcombine.low %v385_v26, %v395_v44  ;;  %v582_v51 = vrot.slane %v581_v38, 4  ;;  %v408_v52 = vrot.slane %v406_v41, 5  ;;  %v416_v53 = vshll.u32 %v2669_v33, 16  ;;  %v2698_v26 = vld [vmem:[%s2492_s30 + $0x40] sm:$0xf] }
  0x5a   : > { %v577_v56 = vsel %vm2540_vm4, %v572_v47, %v576_v20  ;;  %v403_v57 = vor.u32 %v402_v48, %v399_v40  ;;  %v412_v60 = vrot.slane %v410_v45, 4  ;;  %v589_v61 = vshrl.u32 %v2674_v5, 16  ;;  %v2706_v41 = vld [vmem:[%s2492_s30 + $0x44] sm:$0x1] }
  0x5b   : > { %2052 = vmatmul.mubr.msk.bf16.gmra.mxu0 %vm734_vm3, %v1877_v4  ;;  %v587_v3 = vsel %vm2540_vm4, %v582_v51, %v586_v39  ;;  %v418_v9 = vrot.slane %v416_v53, 5  ;;  %v592_v10 = vshll.u32 %v2674_v5, 16  ;;  %v598_v12 = vshll.u32 %v2680_v49, 16  ;;  %v2712_v53 = vld [vmem:[%s2492_s30 + $0x9c] sm:$0xf] }
  0x5c   : > { %v1885_v20 = vcombine.low %v577_v56, %v587_v3  ;;  %v404_v21 = vrot.slane %v403_v57, 4  ;;  %v413_v22 = vor.u32 %v412_v60, %v408_v52  ;;  %v591_v24 = vrot.slane %v589_v61, 4  ;;  %v2718_v61 = vld [vmem:[%s2492_s30 + $0xa0] sm:$0xf] }
  0x5d   : > { %v594_v27 = vrot.slane %v592_v10, 5  ;;  %v600_v29 = vrot.slane %v598_v12, 5  ;;  %v602_v34 = vshrl.u32 %v2680_v49, 16  ;;  %v608_v38 = vshll.u32 %v2686_v2, 16 }
  0x5e   : > { %2068 = vmatmul.mubr.msk.bf16.gmra.mxu1 %vm734_vm3, %v1885_v20  ;;  %v409_v39 = vsel %vm2540_vm4, %v404_v21, %v408_v52  ;;  %v414_v40 = vrot.slane %v413_v22, 4  ;;  %v421_v44 = vshrl.u32 %v2695_v14, 16  ;;  %v424_v47 = vshll.u32 %v2695_v14, 16 }
  0x5f   : > { %v595_v48 = vor.u32 %v594_v27, %v591_v24  ;;  %v604_v45 = vrot.slane %v602_v34, 4  ;;  %v610_v4 = vrot.slane %v608_v38, 5  ;;  %v430_v51 = vshll.u32 %v2698_v26, 16  ;;  %v2726_v38 = vld [vmem:[%s2492_s30 + $0xa4] sm:$0x1] }
  0x60   : > { %v419_v56 = vsel %vm2540_vm4, %v414_v40, %v418_v9  ;;  %v423_v57 = vrot.slane %v421_v44, 4  ;;  %v426_v52 = vrot.slane %v424_v47, 5  ;;  %v434_v60 = vshrl.u32 %v2698_v26, 16 }
  0x61   : > { %v1878_v3 = vcombine.low %v409_v39, %v419_v56  ;;  %v596_v10 = vrot.slane %v595_v48, 4  ;;  %v605_v12 = vor.u32 %v604_v45, %v600_v29  ;;  %v432_v20 = vrot.slane %v430_v51, 5  ;;  %v2731_v51 = vld [vmem:[%s2492_s30 + $0x48] sm:$0xf] }
  0x62   : > { %v427_v21 = vor.u32 %v426_v52, %v423_v57  ;;  %v436_v22 = vrot.slane %v434_v60, 4  ;;  %v440_v24 = vshll.u32 %v2706_v41, 16  ;;  %v613_v27 = vshrl.u32 %v2712_v53, 16  ;;  %v2737_v60 = vld [vmem:[%s2492_s30 + $0x4c] sm:$0xf] }
  0x63   : > { %2055 = vmatprep.mubr.msk.bf16.mxu0 %vm734_vm3, %v1878_v3  ;;  %v601_v9 = vsel %vm2540_vm4, %v596_v10, %v600_v29  ;;  %v606_v34 = vrot.slane %v605_v12, 4  ;;  %v616_v39 = vshll.u32 %v2712_v53, 16  ;;  %v622_v40 = vshll.u32 %v2718_v61, 16 }
  0x64   : > { %v428_v44 = vrot.slane %v427_v21, 4  ;;  %v437_v47 = vor.u32 %v436_v22, %v432_v20  ;;  %v442_v48 = vrot.slane %v440_v24, 5  ;;  %v615_v45 = vrot.slane %v613_v27, 4  ;;  %v2743_v27 = vld [vmem:[%s2492_s30 + $0x50] sm:$0x1] }
  0x65   : > { %v611_v56 = vsel %vm2540_vm4, %v606_v34, %v610_v4  ;;  %v618_v57 = vrot.slane %v616_v39, 5  ;;  %v624_v52 = vrot.slane %v622_v40, 5  ;;  %v626_v29 = vshrl.u32 %v2718_v61, 16 }
  0x66   : > { %v1886_v3 = vcombine.low %v601_v9, %v611_v56  ;;  %v433_v10 = vsel %vm2540_vm4, %v428_v44, %v432_v20  ;;  %v438_v12 = vrot.slane %v437_v47, 4  ;;  %v632_v21 = vshll.u32 %v2726_v38, 16  ;;  %v2753_v44 = vld [vmem:[%s2492_s30 + $0xa8] sm:$0xf] }
  0x67   : > { %v619_v22 = vor.u32 %v618_v57, %v615_v45  ;;  %v628_v24 = vrot.slane %v626_v29, 4  ;;  %v445_v4 = vshrl.u32 %v2731_v51, 16  ;;  %v448_v34 = vshll.u32 %v2731_v51, 16  ;;  %3247 = vst [vmem:[#allocation9_spill] sm:$0xff] %v2753_v44  ;;  %v2756_v29 = vld [vmem:[%s2492_s30 + $0xac] sm:$0xf] }
  0x68   : > { %2071 = vmatprep.mubr.msk.bf16.mxu1 %vm734_vm3, %v1886_v3  ;;  %v443_v9 = vsel %vm2540_vm4, %v438_v12, %v442_v48  ;;  %v634_v39 = vrot.slane %v632_v21, 5  ;;  %v454_v20 = vshll.u32 %v2737_v60, 16  ;;  %v458_v40 = vshrl.u32 %v2737_v60, 16  ;;  %3248 = vst [vmem:[#allocation10_spill] sm:$0xff] %v2756_v29 }
  0x69   : > { %v1879_v47 = vcombine.low %v433_v10, %v443_v9  ;;  %v620_v45 = vrot.slane %v619_v22, 4  ;;  %v629_v56 = vor.u32 %v628_v24, %v624_v52  ;;  %v447_v57 = vrot.slane %v445_v4, 4 }
  0x6a   : > { %v450_v36 = vrot.slane %v448_v34, 5  ;;  %v456_v3 = vrot.slane %v454_v20, 5  ;;  %v460_v63 = vrot.slane %v458_v40, 4  ;;  %v464_v48 = vshll.u32 %v2743_v27, 16  ;;  %v2769_v20 = vld [vmem:[%s2492_s30 + $0x54] sm:$0xf] }
  0x6b   : > { %2056 = vmatmul.mubr.msk.bf16.gmra.mxu0 %vm734_vm3, %v1879_v47  ;;  %v625_v12 = vsel %vm2540_vm4, %v620_v45, %v624_v52  ;;  %v630_v21 = vrot.slane %v629_v56, 4  ;;  %v637_v10 = vshrl.u32 %v2753_v44, 16  ;;  %v640_v22 = vshll.u32 %v2753_v44, 16 }
  0x6c   : > { %v451_v24 = vor.u32 %v450_v36, %v447_v57  ;;  %v461_v4 = vor.u32 %v460_v63, %v456_v3  ;;  %v466_v9 = vrot.slane %v464_v48, 5  ;;  %v646_v34 = vshll.u32 %v2756_v29, 16  ;;  %v2775_v36 = vld [vmem:[%s2492_s30 + $0x58] sm:$0xf] }
  0x6d   : > { %v635_v52 = vsel %vm2540_vm4, %v630_v21, %v634_v39  ;;  %v639_v40 = vrot.slane %v637_v10, 4  ;;  %v642_v47 = vrot.slane %v640_v22, 5  ;;  %v650_v45 = vshrl.u32 %v2756_v29, 16  ;;  %v2785_v10 = vld [vmem:[%s2492_s30 + $0x5c] sm:$0x1] }
  0x6e   : > { %v1887_v63 = vcombine.low %v625_v12, %v635_v52  ;;  %v452_v56 = vrot.slane %v451_v24, 4  ;;  %v462_v57 = vrot.slane %v461_v4, 4  ;;  %v648_v48 = vrot.slane %v646_v34, 5  ;;  %v2790_v24 = vld [vmem:[%s2492_s30 + $0xb4] sm:$0xf] }
  0x6f   : > { %v643_v62 = vor.u32 %v642_v47, %v639_v40  ;;  %v652_v55 = vrot.slane %v650_v45, 4  ;;  %v656_v37 = vshll.u32 %v2765_v15, 16  ;;  %v469_v0 = vshrl.u32 %v2769_v20, 16  ;;  %v2793_v47 = vld [vmem:[%s2492_s30 + $0xb8] sm:$0xf] }
  0x70   : > { %2072 = vmatmul.mubr.msk.bf16.gmra.mxu1 %vm734_vm3, %v1887_v63  ;;  %v457_v39 = vsel %vm2540_vm4, %v452_v56, %v456_v3  ;;  %v467_v21 = vsel %vm2540_vm4, %v462_v57, %v466_v9  ;;  %v472_v12 = vshll.u32 %v2769_v20, 16  ;;  %v478_v22 = vshll.u32 %v2775_v36, 16 }
  0x71   : > { %v1880_v4 = vcombine.low %v457_v39, %v467_v21  ;;  %v644_v34 = vrot.slane %v643_v62, 4  ;;  %v653_v52 = vor.u32 %v652_v55, %v648_v48  ;;  %v658_v40 = vrot.slane %v656_v37, 5  ;;  %v2802_v37 = vld [vmem:[%s2492_s30 + $0xbc] sm:$0x1] }
  0x72   : > { %v471_v45 = vrot.slane %v469_v0, 4  ;;  %v474_v3 = vrot.slane %v472_v12, 5  ;;  %v480_v63 = vrot.slane %v478_v22, 5  ;;  %v482_v9 = vshrl.u32 %v2775_v36, 16  ;;  %3250 = vst [vmem:[#allocation12_spill] sm:$0xff] %v2802_v37 }
  0x73   : > { %2059 = vmatprep.mubr.msk.bf16.mxu0 %vm734_vm3, %v1880_v4  ;;  %v649_v56 = vsel %vm2540_vm4, %v644_v34, %v648_v48  ;;  %v654_v57 = vrot.slane %v653_v52, 4  ;;  %v488_v54 = vshll.u32 %v2785_v10, 16  ;;  %v661_v39 = vshrl.u32 %v2790_v24, 16 }
  0x74   : > { %v475_v62 = vor.u32 %v474_v3, %v471_v45  ;;  %v484_v55 = vrot.slane %v482_v9, 4  ;;  %v664_v0 = vshll.u32 %v2790_v24, 16  ;;  %v670_v21 = vshll.u32 %v2793_v47, 16 }
  0x75   : > { %v659_v12 = vsel %vm2540_vm4, %v654_v57, %v658_v40  ;;  %v490_v22 = vrot.slane %v488_v54, 5  ;;  %v663_v4 = vrot.slane %v661_v39, 4  ;;  %v674_v48 = vshrl.u32 %v2793_v47, 16 }
  0x76   : > { %v1888_v34 = vcombine.low %v649_v56, %v659_v12  ;;  %v476_v52 = vrot.slane %v475_v62, 4  ;;  %v485_v15 = vor.u32 %v484_v55, %v480_v63  ;;  %v666_v44 = vrot.slane %v664_v0, 5 }
  0x77   : > { %v672_v29 = vrot.slane %v670_v21, 5  ;;  %v676_v45 = vrot.slane %v674_v48, 4  ;;  %v680_v3 = vshll.u32 %v2802_v37, 16  ;;  %v1938_v40 = vrot.slane %v2501_v6, 9 }
  0x78   : > { %2075 = vmatprep.mubr.msk.bf16.mxu1 %vm734_vm3, %v1888_v34  ;;  %v481_v54 = vsel %vm2540_vm4, %v476_v52, %v480_v63  ;;  %v486_v56 = vrot.slane %v485_v15, 4  ;;  %v667_v57 = vor.u32 %v666_v44, %v663_v4  ;;  %v1261_v39 = vrot.slane %v2504_v7, 5 }
  0x79   : > { %v677_v62 = vor.u32 %v676_v45, %v672_v29  ;;  %v682_v55 = vrot.slane %v680_v3, 5  ;;  %v1907_v0 = vcombine.low %v2533_v30, %v2536_v31  ;;  %v1939_v21 = vrot.slane %v2533_v30, 9 }
  0x7a   : > { %v491_v12 = vsel %vm2540_vm4, %v486_v56, %v490_v22  ;;  %v668_v48 = vrot.slane %v667_v57, 4  ;;  %v1262_v34 = vsel %vm2812_vm7, %v1938_v40, %v1261_v39  ;;  %v1263_v37 = vrot.slane %v1261_v39, 4 }
  0x7b   : > { %v1881_v63 = vcombine.low %v481_v54, %v491_v12  ;;  %v678_v15 = vrot.slane %v677_v62, 4  ;;  %v3253_v44 = vrot.slane %v2536_v31, 5  ;;  %v3255_v22 = vrot.slane %v2507_v8, 5 }
  0x7c   : > { %v673_v30 = vsel %vm2540_vm4, %v668_v48, %v672_v29  ;;  %v1908_v40 = vcombine.low %v2578_v18, %v2583_v23  ;;  %v1940_v54 = vrot.slane %v2578_v18, 9  ;;  %v3256_v57 = vrot.slane %v2547_v42, 5 }
  0x7d   : > { %v1269_v4 = vsel %vm2812_vm7, %v1939_v21, %v3253_v44  ;;  %v3254_v52 = vmov %v3253_v44  ;;  %v1265_v3 = vsel %vm2812_vm7, %v1263_v37, %v3255_v22  ;;  %2060 = vmatmul.mubr.msk.bf16.gmra.mxu0 %vm734_vm3, %v1881_v63  ;;  %v683_v56 = vsel %vm2540_vm4, %v678_v15, %v682_v55 }
  0x7e   : > { %v1270_v45 = vrot.slane %v3254_v52, 4  ;;  %v1955_v31 = vcombine.low %v1262_v34, %v1265_v3  ;;  %v1275_v8 = vrot.slane %v2583_v23, 5  ;;  %v1889_v39 = vcombine.low %v673_v30, %v683_v56 }
  0x7f   : > { %v1278_v62 = vrot.slane %v2591_v28, 5  ;;  %v1282_v32 = vrot.slane %v2622_v11, 5  ;;  %v1941_v42 = vrot.slane %v2616_v1, 9  ;;  %v1289_v55 = vrot.slane %v2661_v19, 5 }
  0x80   : > { %v1272_v29 = vsel %vm2812_vm7, %v1270_v45, %v3256_v57  ;;  %2115 = vmatprep.mubr.msk.bf16.mxu0 %vm734_vm3, %v1955_v31  ;;  %v1276_v18 = vsel %vm2812_vm7, %v1940_v54, %v1275_v8  ;;  %v1277_v21 = vrot.slane %v1275_v8, 4  ;;  %2076 = vmatmul.mubr.msk.bf16.gmra.mxu1 %vm734_vm3, %v1889_v39  ;;  %v3257_v23 = vcombine.low %v2501_v6, %v2504_v7 }
  0x81   : > { %v1956_v37 = vcombine.low %v1269_v4, %v1272_v29  ;;  %v1284_v12 = vrot.slane %v1282_v32, 4  ;;  %v1285_v48 = vrot.slane %v2626_v25, 5  ;;  %v1942_v34 = vrot.slane %v2655_v58, 9 }
  0x82   : > { %2081 = vmatprep.mubr.msk.bf16.mxu1 %vm734_vm3, %v3257_v23  ;;  %v1279_v28 = vsel %vm2812_vm7, %v1277_v21, %v1278_v62  ;;  %v1291_v15 = vrot.slane %v1289_v55, 4  ;;  %v1292_v44 = vrot.slane %v2669_v33, 5  ;;  %v1296_v4 = vrot.slane %v2698_v26, 5 }
  0x83   : > { %v1957_v63 = vcombine.low %v1276_v18, %v1279_v28  ;;  %v1283_v52 = vsel %vm2812_vm7, %v1941_v42, %v1282_v32  ;;  %v1286_v6 = vsel %vm2812_vm7, %v1284_v12, %v1285_v48  ;;  %v1290_v7 = vsel %vm2812_vm7, %v1942_v34, %v1289_v55 }
  0x84   : > { %v1943_v25 = vrot.slane %v2695_v14, 9  ;;  %v1303_v45 = vrot.slane %v2737_v60, 5  ;;  %v1293_v33 = vsel %vm2812_vm7, %v1291_v15, %v1292_v44  ;;  %v1298_v30 = vrot.slane %v1296_v4, 4 }
  0x85   : > { %2116 = vmatmul.mubr.msk.bf16.vlgmr.msra.gmra.mxu0 %vm734_vm3, %v1956_v37  ;;  %v1299_v22 = vrot.slane %v2706_v41, 5  ;;  %v1944_v3 = vrot.slane %v2731_v51, 9  ;;  %v1306_v56 = vrot.slane %v2743_v27, 5  ;;  %v1310_v31 = vrot.slane %v2775_v36, 5 }
  0x86   : > { %2119 = vmatprep.mubr.msk.bf16.mxu0 %vm734_vm3, %v1957_v63  ;;  %v1305_v54 = vrot.slane %v1303_v45, 4  ;;  %v1958_v57 = vcombine.low %v1283_v52, %v1286_v6  ;;  %v1959_v29 = vcombine.low %v1290_v7, %v1293_v33  ;;  %v1317_v8 = vrot.slane %v2522_v16, 5 }
  0x87   : > { %v1297_v39 = vsel %vm2812_vm7, %v1943_v25, %v1296_v4  ;;  %v1300_v41 = vsel %vm2812_vm7, %v1298_v30, %v1299_v22  ;;  %v1304_v37 = vsel %vm2812_vm7, %v1944_v3, %v1303_v45  ;;  %v1945_v27 = vrot.slane %v2769_v20, 9 }
  0x88   : > { %2082 = vmatmul.mubr.msk.bf16.vlgmr.msra.gmra.mxu1 %vm734_vm3, %v1907_v0  ;;  %v1307_v0 = vsel %vm2812_vm7, %v1305_v54, %v1306_v56  ;;  %v1312_v62 = vrot.slane %v1310_v31, 4  ;;  %v1946_v18 = vrot.slane %v2517_v13, 9  ;;  %v1320_v21 = vrot.slane %v2525_v17, 5  ;;  %v3258_v54 = vld [vmem:[#allocation10_spill] sm:$0xff]  ;;  %v3259_v56 = vld [vmem:[#allocation9_spill] sm:$0xff] }
  0x89   : > { %2085 = vmatprep.mubr.msk.bf16.mxu1 %vm734_vm3, %v1908_v40  ;;  %v1313_v40 = vrot.slane %v2785_v10, 5  ;;  %v1909_v32 = vcombine.low %v2616_v1, %v2622_v11  ;;  %v1910_v42 = vcombine.low %v2655_v58, %v2661_v19  ;;  %v1911_v55 = vcombine.low %v2695_v14, %v2698_v26 }
  0x8a   : > { %v1960_v23 = vcombine.low %v1297_v39, %v1300_v41  ;;  %v1912_v28 = vcombine.low %v2731_v51, %v2737_v60  ;;  %v1319_v10 = vrot.slane %v1317_v8, 4  ;;  %v1917_v12 = vcombine.low %v2635_v35, %v2641_v43  ;;  %v3260_v39 = vld [vmem:[#allocation11_spill] sm:$0xff] }
  0x8b   : > { %v1961_v17 = vcombine.low %v1304_v37, %v1307_v0  ;;  %v1311_v1 = vsel %vm2812_vm7, %v1945_v27, %v1310_v31  ;;  %v1949_v11 = vrot.slane %v2635_v35, 9  ;;  %v1338_v58 = vrot.slane %v2641_v43, 5 }
  0x8c   : > { %v1314_v19 = vsel %vm2812_vm7, %v1312_v62, %v1313_v40  ;;  %v1318_v14 = vsel %vm2812_vm7, %v1946_v18, %v1317_v8  ;;  %v1324_v26 = vrot.slane %v2562_v59, 5  ;;  %v1341_v51 = vrot.slane %v2648_v50, 5 }
  0x8d   : > { %2120 = vmatmul.mubr.msk.bf16.gmra.mxu0 %vm734_vm3, %v1958_v57  ;;  %v2925_v60 = vsel %vm2812_vm7, %v1949_v11, %v1338_v58  ;;  %v1340_v48 = vrot.slane %v1338_v58, 4  ;;  %v1918_v34 = vcombine.low %v2674_v5, %v2680_v49  ;;  %v1950_v63 = vrot.slane %v2674_v5, 9  ;;  %v3262_v11 = vld [vmem:[#allocation5_spill] sm:$0xff]  ;;  %v3263_v58 = vld [vmem:[#allocation6_spill] sm:$0xff] }
  0x8e   : > { %2123 = vmatprep.mubr.msk.bf16.mxu0 %vm734_vm3, %v1959_v29  ;;  %v1321_v15 = vsel %vm2812_vm7, %v1319_v10, %v1320_v21  ;;  %v1345_v44 = vrot.slane %v2680_v49, 5  ;;  %v1348_v50 = vrot.slane %v2686_v2, 5  ;;  %v1919_v4 = vcombine.low %v2712_v53, %v2718_v61 }
  0x8f   : > { %v1331_v52 = vrot.slane %v2604_v46, 5  ;;  %v1342_v6 = vsel %vm2812_vm7, %v1340_v48, %v1341_v51  ;;  %v1951_v7 = vrot.slane %v2712_v53, 9  ;;  %v1352_v25 = vrot.slane %v2718_v61, 5 }
  0x90   : > { %2086 = vmatmul.mubr.msk.bf16.gmra.mxu1 %vm734_vm3, %v1909_v32  ;;  %v1966_v45 = vcombine.low %v2925_v60, %v1342_v6  ;;  %v1346_v33 = vsel %vm2812_vm7, %v1950_v63, %v1345_v44  ;;  %v1347_v30 = vrot.slane %v1345_v44, 4  ;;  %v1355_v2 = vrot.slane %v2726_v38, 5  ;;  %v3261_v32 = vld [vmem:[#allocation12_spill] sm:$0xff]  ;;  %v3264_v44 = vld [vmem:[#allocation7_spill] sm:$0xff] }
  0x91   : > { %2089 = vmatprep.mubr.msk.bf16.mxu1 %vm734_vm3, %v1910_v42  ;;  %v1353_v22 = vsel %vm2812_vm7, %v1951_v7, %v1352_v25  ;;  %v1354_v3 = vrot.slane %v1352_v25, 4  ;;  %v1920_v31 = vcombine.low %v3259_v56, %v3258_v54  ;;  %v1952_v57 = vrot.slane %v3259_v56, 9  ;;  %v3265_v7 = vld [vmem:[#allocation8_spill] sm:$0xff] }
  0x92   : > { %v1349_v29 = vsel %vm2812_vm7, %v1347_v30, %v1348_v50  ;;  %v1359_v8 = vrot.slane %v3258_v54, 5  ;;  %v1362_v41 = vrot.slane %v3260_v39, 5  ;;  %v1921_v38 = vcombine.low %v2790_v24, %v2793_v47 }
  0x93   : > { %v1967_v37 = vcombine.low %v1346_v33, %v1349_v29  ;;  %v1356_v27 = vsel %vm2812_vm7, %v1354_v3, %v1355_v2  ;;  %v1953_v0 = vrot.slane %v2790_v24, 9  ;;  %v1366_v62 = vrot.slane %v2793_v47, 5 }
  0x94   : > { %v1968_v40 = vcombine.low %v1353_v22, %v1356_v27  ;;  %v1360_v18 = vsel %vm2812_vm7, %v1952_v57, %v1359_v8  ;;  %v1361_v21 = vrot.slane %v1359_v8, 4  ;;  %v1369_v42 = vrot.slane %v3261_v32, 5 }
  0x95   : > { %2124 = vmatmul.mubr.msk.bf16.gmra.mxu0 %vm734_vm3, %v1960_v23  ;;  %v1367_v23 = vsel %vm2812_vm7, %v1953_v0, %v1366_v62  ;;  %v1368_v10 = vrot.slane %v1366_v62, 4  ;;  %v1947_v24 = vrot.slane %v3262_v11, 9  ;;  %v1327_v47 = vrot.slane %v3263_v58, 5 }
  0x96   : > { %2127 = vmatprep.mubr.msk.bf16.mxu0 %vm734_vm3, %v1961_v17  ;;  %v1962_v17 = vcombine.low %v1311_v1, %v1314_v19  ;;  %v1363_v51 = vsel %vm2812_vm7, %v1361_v21, %v1362_v41  ;;  %v1963_v60 = vcombine.low %v1318_v14, %v1321_v15  ;;  %v1326_v48 = vrot.slane %v1324_v26, 4 }
  0x97   : > { %v1969_v63 = vcombine.low %v1360_v18, %v1363_v51  ;;  %v1948_v50 = vrot.slane %v3264_v44, 9  ;;  %v1333_v6 = vrot.slane %v1331_v52, 4  ;;  %v1334_v25 = vrot.slane %v3265_v7, 5 }
  0x98   : > { %2090 = vmatmul.mubr.msk.bf16.gmra.mxu1 %vm734_vm3, %v1911_v55  ;;  %v1370_v55 = vsel %vm2812_vm7, %v1368_v10, %v1369_v42  ;;  %v1913_v1 = vcombine.low %v2769_v20, %v2775_v36  ;;  %v1914_v19 = vcombine.low %v2517_v13, %v2522_v16  ;;  %v1325_v14 = vsel %vm2812_vm7, %v1947_v24, %v1324_v26  ;;  %v1667_v10 = vld [vmem:[%s2447_s26 + $0x10] sm:$0xff] }
  0x99   : > { %2093 = vmatprep.mubr.msk.bf16.mxu1 %vm734_vm3, %v1912_v28  ;;  %v1970_v28 = vcombine.low %v1367_v23, %v1370_v55  ;;  %v1328_v15 = vsel %vm2812_vm7, %v1326_v48, %v1327_v47  ;;  %v1332_v33 = vsel %vm2812_vm7, %v1948_v50, %v1331_v52  ;;  %v1335_v30 = vsel %vm2812_vm7, %v1333_v6, %v1334_v25  ;;  %v1665_v47 = vld [vmem:[%s2447_s26] sm:$0xff] }
  0x9a   : > { %v1964_v20 = vcombine.low %v1325_v14, %v1328_v15  ;;  %v1965_v13 = vcombine.low %v1332_v33, %v1335_v30  ;;  %v1915_v16 = vcombine.low %v3262_v11, %v2562_v59  ;;  %v1916_v36 = vcombine.low %v3264_v44, %v2604_v46  ;;  %v1668_v44 = vld [vmem:[%s2447_s26 + $0x18] sm:$0xff] }
  0x9d   : > { %2128 = vmatmul.mubr.msk.bf16.gmra.mxu0 %vm734_vm3, %v1962_v17 }
  0x9e   : > { %2131 = vmatprep.mubr.msk.bf16.mxu0 %vm734_vm3, %v1963_v60 }
  0xa0   : > { %2094 = vmatmul.mubr.msk.bf16.gmra.mxu1 %vm734_vm3, %v1913_v1  ;;  %v1666_v1 = vld [vmem:[%s2447_s26 + $0x8] sm:$0xff] }
  0xa1   : > { %2097 = vmatprep.mubr.msk.bf16.mxu1 %vm734_vm3, %v1914_v19 }
  0xa5   : > { %2132 = vmatmul.mubr.msk.bf16.gmra.mxu0 %vm734_vm3, %v1964_v20  ;;  %v1671_v20 = vld [vmem:[%s2447_s26 + $0x30] sm:$0xff] }
  0xa6   : > { %2135 = vmatprep.mubr.msk.bf16.mxu0 %vm734_vm3, %v1965_v13 }
  0xa8   : > { %2098 = vmatmul.mubr.msk.bf16.gmra.mxu1 %vm734_vm3, %v1915_v16 }
  0xa9   : > { %2101 = vmatprep.mubr.msk.bf16.mxu1 %vm734_vm3, %v1916_v36 }
  0xad   : > { %2136 = vmatmul.mubr.msk.bf16.gmra.mxu0 %vm734_vm3, %v1966_v45 }
  0xae   : > { %2139 = vmatprep.mubr.msk.bf16.mxu0 %vm734_vm3, %v1967_v37 }
  0xb0   : > { %2102 = vmatmul.mubr.msk.bf16.gmra.mxu1 %vm734_vm3, %v1917_v12 }
  0xb1   : > { %2105 = vmatprep.mubr.msk.bf16.mxu1 %vm734_vm3, %v1918_v34 }
  0xb5   : > { %2140 = vmatmul.mubr.msk.bf16.gmra.mxu0 %vm734_vm3, %v1968_v40 }
  0xb6   : > { %2143 = vmatprep.mubr.msk.bf16.mxu0 %vm734_vm3, %v1969_v63 }
  0xb8   : > { %2106 = vmatmul.mubr.msk.bf16.gmra.mxu1 %vm734_vm3, %v1919_v4 }
  0xb9   : > { %2109 = vmatprep.mubr.msk.bf16.mxu1 %vm734_vm3, %v1920_v31 }
  0xbd   : > { %2144 = vmatmul.mubr.msk.bf16.gmra.mxu0 %vm734_vm3, %v1970_v28 }
  0xc0   : > { %2110 = vmatmul.mubr.msk.bf16.gmra.mxu1 %vm734_vm3, %v1921_v38 }
 0x109   : > { %v2049_v59 = vpop.f32.mrf.mxu0 }
 0x10b   : > { %v821_v35 = vpop.f32.mrf.mxu0 }
 0x10d   : > { %v2050_v5 = vpop.f32.mrf.mxu0 }
 0x10e   : > { %v3021_v46 = vpop.f32.mrf.mxu1 }
 0x10f   : > { %v824_v9 = vpop.f32.mrf.mxu0 }
 0x110   : > { %v3023_v43 = vpop.f32.mrf.mxu1 }
 0x112   : > { %v3025_v49 = vpop.f32.mrf.mxu1 }
 0x114   : > { %v3027_v12 = vpop.f32.mrf.mxu1 }
 0x11b   : > { %v2053_v53 = vpop.f32.mrf.mxu0 }
 0x11d   : > { %v837_v26 = vpop.f32.mrf.mxu0 }
 0x11e   : > { %v3029_v61 = vpop.f32.mrf.mxu1 }
 0x11f   : > { %v2054_v4 = vpop.f32.mrf.mxu0 }
 0x120   : > { %v3031_v34 = vpop.f32.mrf.mxu1 }
 0x121   : > { %v3035_v45 = vpop.f32.mrf.mxu0 }
 0x122   : > { %v3033_v52 = vpop.f32.mrf.mxu1 }
 0x124   : > { %v3037_v2 = vpop.f32.mrf.mxu1 }
 0x12b   : > { %v3039_v22 = vpop.f32.mrf.mxu0 }
 0x12d   : > { %v3043_v54 = vpop.f32.mrf.mxu0 }
 0x12f   : > { %v3047_v31 = vpop.f32.mrf.mxu0 }
 0x130   : > { %v3041_v3 = vpop.f32.mrf.mxu1 }
 0x131   : > { %v3051_v29 = vpop.f32.mrf.mxu0 }
 0x132   : > { %v3045_v56 = vpop.f32.mrf.mxu1 }
 0x134   : > { %v3049_v57 = vpop.f32.mrf.mxu1 }
 0x136   : > { %v3053_v8 = vpop.f32.mrf.mxu1 }
 0x13d   : > { %v3055_v39 = vpop.f32.mrf.mxu0 }
 0x13f   : > { %v3057_v41 = vpop.f32.mrf.mxu0 }
 0x140   : > { %v3059_v38 = vpop.f32.mrf.mxu1 }
 0x141   : > { %v3061_v37 = vpop.f32.mrf.mxu0 }
 0x142   : > { %v3063_v27 = vpop.f32.mrf.mxu1 }
 0x143   : > { %v3065_v0 = vpop.f32.mrf.mxu0 }
 0x144   : > { %v3067_v62 = vpop.f32.mrf.mxu1 }
 0x145   : > { %v2117_v40 = vpop.f32.mrf.mxu0 }
 0x146   : > { %v3069_v18 = vpop.f32.mrf.mxu1 }
 0x147   : > { %v1506_v21 = vpop.f32.mrf.mxu0 }
 0x148   : > { %v2083_v32 = vpop.f32.mrf.mxu1 }
 0x149   : > { %v1122_v42 = vadd.f32 %v2083_v32, %v2049_v59  ;;  %v2118_v23 = vpop.f32.mrf.mxu0 }
 0x14a   : > { %v1113_v17 = vpop.f32.mrf.mxu1 }
 0x14b   : > { %v1635_v11 = vadd.f32 %v2117_v40, %v1122_v42  ;;  %v1114_v24 = vadd.f32 %v1113_v17, %v821_v35  ;;  %v1509_v58 = vpop.f32.mrf.mxu0  ;;  %v1672_v42 = vld [vmem:[%s2447_s26 + $0x38] sm:$0xff] }
 0x14c   : > { %v2084_v51 = vpop.f32.mrf.mxu1 }
 0x14d   : > { %v1699_v60 = vadd.f32 %v1667_v10, %v1635_v11  ;;  %v1633_v48 = vadd.f32 %v1506_v21, %v1114_v24  ;;  %v1125_v63 = vadd.f32 %v2084_v51, %v2050_v5  ;;  %v2121_v55 = vpop.f32.mrf.mxu0  ;;  %v1669_v5 = vld [vmem:[%s2447_s26 + $0x20] sm:$0xff]  ;;  %v1670_v24 = vld [vmem:[%s2447_s26 + $0x28] sm:$0xff] }
 0x14e   : > { %v1116_v50 = vpop.f32.mrf.mxu1 }
 0x14f   : > { %1731 = vst [vmem:[%s2447_s26 + $0x10] sm:$0xff] %v1699_v60  ;;  %v1697_v6 = vadd.f32 %v1665_v47, %v1633_v48  ;;  %v1636_v7 = vadd.f32 %v2118_v23, %v1125_v63  ;;  %v1117_v25 = vadd.f32 %v1116_v50, %v824_v9  ;;  %v1522_v28 = vpop.f32.mrf.mxu0  ;;  %v1675_v48 = vld [vmem:[%s2447_s26 + $0x50] sm:$0xff] }
 0x150   : > { %v2087_v19 = vpop.f32.mrf.mxu1 }
 0x151   : > { %1729 = vst [vmem:[%s2447_s26] sm:$0xff] %v1697_v6  ;;  %v1700_v14 = vadd.f32 %v1668_v44, %v1636_v7  ;;  %v1634_v15 = vadd.f32 %v1509_v58, %v1117_v25  ;;  %v1138_v33 = vadd.f32 %v2087_v19, %v2053_v53  ;;  %v2122_v30 = vpop.f32.mrf.mxu0  ;;  %v1673_v6 = vld [vmem:[%s2447_s26 + $0x40] sm:$0xff]  ;;  %v1676_v19 = vld [vmem:[%s2447_s26 + $0x58] sm:$0xff] }
 0x152   : > { %v1129_v13 = vpop.f32.mrf.mxu1 }
 0x153   : > { %1732 = vst [vmem:[%s2447_s26 + $0x18] sm:$0xff] %v1700_v14  ;;  %v1698_v16 = vadd.f32 %v1666_v1, %v1634_v15  ;;  %v1639_v36 = vadd.f32 %v2121_v55, %v1138_v33  ;;  %v1130_v59 = vadd.f32 %v1129_v13, %v837_v26  ;;  %v1525_v35 = vpop.f32.mrf.mxu0 }
 0x154   : > { %v2088_v9 = vpop.f32.mrf.mxu1 }
 0x155   : > { %1730 = vst [vmem:[%s2447_s26 + $0x8] sm:$0xff] %v1698_v16  ;;  %v1703_v40 = vadd.f32 %v1671_v20, %v1639_v36  ;;  %v1637_v21 = vadd.f32 %v1522_v28, %v1130_v59  ;;  %v1141_v32 = vadd.f32 %v2088_v9, %v2054_v4  ;;  %v2125_v53 = vpop.f32.mrf.mxu0  ;;  %v1674_v20 = vld [vmem:[%s2447_s26 + $0x48] sm:$0xff] }
 0x156   : > { %v1132_v23 = vpop.f32.mrf.mxu1 }
 0x157   : > { %1735 = vst [vmem:[%s2447_s26 + $0x30] sm:$0xff] %v1703_v40  ;;  %v1701_v10 = vadd.f32 %v1669_v5, %v1637_v21  ;;  %v1640_v17 = vadd.f32 %v2122_v30, %v1141_v32  ;;  %v1133_v11 = vadd.f32 %v1132_v23, %v3035_v45  ;;  %v1538_v26 = vpop.f32.mrf.mxu0  ;;  %v1677_v32 = vld [vmem:[%s2447_s26 + $0x60] sm:$0xff] }
 0x158   : > { %v2091_v58 = vpop.f32.mrf.mxu1 }
 0x159   : > { %1733 = vst [vmem:[%s2447_s26 + $0x20] sm:$0xff] %v1701_v10  ;;  %v1704_v47 = vadd.f32 %v1672_v42, %v1640_v17  ;;  %v1638_v51 = vadd.f32 %v1525_v35, %v1133_v11  ;;  %v1154_v4 = vadd.f32 %v2091_v58, %v3039_v22  ;;  %v2126_v60 = vpop.f32.mrf.mxu0  ;;  %v1679_v35 = vld [vmem:[%s2447_s26 + $0x70] sm:$0xff]  ;;  %v1680_v17 = vld [vmem:[%s2447_s26 + $0x78] sm:$0xff] }
 0x15a   : > { %v1145_v63 = vpop.f32.mrf.mxu1 }
 0x15b   : > { %1736 = vst [vmem:[%s2447_s26 + $0x38] sm:$0xff] %v1704_v47  ;;  %v1702_v55 = vadd.f32 %v1670_v24, %v1638_v51  ;;  %v1643_v44 = vadd.f32 %v2125_v53, %v1154_v4  ;;  %v1146_v45 = vadd.f32 %v1145_v63, %v3043_v54  ;;  %v1541_v50 = vpop.f32.mrf.mxu0  ;;  %v1678_v47 = vld [vmem:[%s2447_s26 + $0x68] sm:$0xff]  ;;  %v1683_v63 = vld [vmem:[%s2447_s26 + $0x90] sm:$0xff] }
 0x15c   : > { %v2092_v7 = vpop.f32.mrf.mxu1 }
 0x15d   : > { %1734 = vst [vmem:[%s2447_s26 + $0x28] sm:$0xff] %v1702_v55  ;;  %v1707_v25 = vadd.f32 %v1675_v48, %v1643_v44  ;;  %v1641_v28 = vadd.f32 %v1538_v26, %v1146_v45  ;;  %v1157_v22 = vadd.f32 %v2092_v7, %v3047_v31  ;;  %v2129_v1 = vpop.f32.mrf.mxu0 }
 0x15e   : > { %v1148_v14 = vpop.f32.mrf.mxu1 }
 0x15f   : > { %1739 = vst [vmem:[%s2447_s26 + $0x50] sm:$0xff] %v1707_v25  ;;  %v1705_v15 = vadd.f32 %v1673_v6, %v1641_v28  ;;  %v1644_v33 = vadd.f32 %v2126_v60, %v1157_v22  ;;  %v1149_v54 = vadd.f32 %v1148_v14, %v3051_v29  ;;  %v1554_v30 = vpop.f32.mrf.mxu0  ;;  %v1681_v6 = vld [vmem:[%s2447_s26 + $0x80] sm:$0xff] }
 0x160   : > { %v2095_v13 = vpop.f32.mrf.mxu1 }
 0x161   : > { %1737 = vst [vmem:[%s2447_s26 + $0x40] sm:$0xff] %v1705_v15  ;;  %v1708_v16 = vadd.f32 %v1676_v19, %v1644_v33  ;;  %v1642_v36 = vadd.f32 %v1541_v50, %v1149_v54  ;;  %v1170_v31 = vadd.f32 %v2095_v13, %v3055_v39  ;;  %v2130_v59 = vpop.f32.mrf.mxu0  ;;  %v1682_v54 = vld [vmem:[%s2447_s26 + $0x88] sm:$0xff] }
 0x162   : > { %v1161_v5 = vpop.f32.mrf.mxu1 }
 0x163   : > { %1740 = vst [vmem:[%s2447_s26 + $0x58] sm:$0xff] %v1708_v16  ;;  %v1706_v9 = vadd.f32 %v1674_v20, %v1642_v36  ;;  %v1647_v40 = vadd.f32 %v2129_v1, %v1170_v31  ;;  %v1162_v29 = vadd.f32 %v1161_v5, %v3057_v41  ;;  %v1557_v21 = vpop.f32.mrf.mxu0  ;;  %v1684_v1 = vld [vmem:[%s2447_s26 + $0x98] sm:$0xff]  ;;  %v1687_v36 = vld [vmem:[%s2447_s26 + $0xb0] sm:$0xff] }
 0x164   : > { %v2096_v53 = vpop.f32.mrf.mxu1 }
 0x165   : > { %1738 = vst [vmem:[%s2447_s26 + $0x48] sm:$0xff] %v1706_v9  ;;  %v1711_v42 = vadd.f32 %v1679_v35, %v1647_v40  ;;  %v1645_v23 = vadd.f32 %v1554_v30, %v1162_v29  ;;  %v1173_v39 = vadd.f32 %v2096_v53, %v3061_v37  ;;  %v2133_v10 = vpop.f32.mrf.mxu0  ;;  %v1685_v9 = vld [vmem:[%s2447_s26 + $0xa0] sm:$0xff]  ;;  %v1688_v53 = vld [vmem:[%s2447_s26 + $0xb8] sm:$0xff] }
 0x166   : > { %v1164_v11 = vpop.f32.mrf.mxu1 }
 0x167   : > { %1743 = vst [vmem:[%s2447_s26 + $0x70] sm:$0xff] %v1711_v42  ;;  %v1709_v26 = vadd.f32 %v1677_v32, %v1645_v23  ;;  %v1648_v24 = vadd.f32 %v2130_v59, %v1173_v39  ;;  %v1165_v41 = vadd.f32 %v1164_v11, %v3065_v0  ;;  %v1570_v58 = vpop.f32.mrf.mxu0 }
 0x168   : > { %v2099_v51 = vpop.f32.mrf.mxu1 }
 0x169   : > { %1741 = vst [vmem:[%s2447_s26 + $0x60] sm:$0xff] %v1709_v26  ;;  %v1712_v4 = vadd.f32 %v1680_v17, %v1648_v24  ;;  %v1646_v60 = vadd.f32 %v1557_v21, %v1165_v41  ;;  %v1186_v37 = vadd.f32 %v2099_v51, %v3021_v46  ;;  %v2134_v48 = vpop.f32.mrf.mxu0  ;;  %v1686_v17 = vld [vmem:[%s2447_s26 + $0xa8] sm:$0xff] }
 0x16a   : > { %v1177_v55 = vpop.f32.mrf.mxu1 }
 0x16b   : > { %1744 = vst [vmem:[%s2447_s26 + $0x78] sm:$0xff] %v1712_v4  ;;  %v1710_v44 = vadd.f32 %v1678_v47, %v1646_v60  ;;  %v1651_v45 = vadd.f32 %v2133_v10, %v1186_v37  ;;  %v1178_v0 = vadd.f32 %v1177_v55, %v3023_v43  ;;  %v1573_v50 = vpop.f32.mrf.mxu0  ;;  %v1689_v37 = vld [vmem:[%s2447_s26 + $0xc0] sm:$0xff] }
 0x16c   : > { %v2100_v7 = vpop.f32.mrf.mxu1 }
 0x16d   : > { %1742 = vst [vmem:[%s2447_s26 + $0x68] sm:$0xff] %v1710_v44  ;;  %v1715_v25 = vadd.f32 %v1683_v63, %v1651_v45  ;;  %v1649_v28 = vadd.f32 %v1570_v58, %v1178_v0  ;;  %v1189_v46 = vadd.f32 %v2100_v7, %v3025_v49  ;;  %v2137_v22 = vpop.f32.mrf.mxu0  ;;  %v1691_v58 = vld [vmem:[%s2447_s26 + $0xd0] sm:$0xff]  ;;  %v1692_v45 = vld [vmem:[%s2447_s26 + $0xd8] sm:$0xff]  ;;  %v1690_v7 = vld [vmem:[%s2447_s26 + $0xc8] sm:$0xff] }
 0x16e   : > { %v1180_v19 = vpop.f32.mrf.mxu1 }
 0x16f   : > { %1747 = vst [vmem:[%s2447_s26 + $0x90] sm:$0xff] %v1715_v25  ;;  %v1713_v14 = vadd.f32 %v1681_v6, %v1649_v28  ;;  %v1652_v15 = vadd.f32 %v2134_v48, %v1189_v46  ;;  %v1181_v43 = vadd.f32 %v1180_v19, %v3027_v12  ;;  %v1586_v33 = vpop.f32.mrf.mxu0 }
 0x170   : > { %v2103_v30 = vpop.f32.mrf.mxu1 }
 0x171   : > { %1745 = vst [vmem:[%s2447_s26 + $0x80] sm:$0xff] %v1713_v14  ;;  %v1716_v20 = vadd.f32 %v1684_v1, %v1652_v15  ;;  %v1650_v13 = vadd.f32 %v1573_v50, %v1181_v43  ;;  %v1202_v49 = vadd.f32 %v2103_v30, %v3029_v61  ;;  %v2138_v16 = vpop.f32.mrf.mxu0  ;;  %v1695_v1 = vld [vmem:[%s2447_s26 + $0xf0] sm:$0xff]  ;;  %v1693_v43 = vld [vmem:[%s2447_s26 + $0xe0] sm:$0xff] }
 0x172   : > { %v1193_v31 = vpop.f32.mrf.mxu1 }
 0x173   : > { %1748 = vst [vmem:[%s2447_s26 + $0x98] sm:$0xff] %v1716_v20  ;;  %v1714_v59 = vadd.f32 %v1682_v54, %v1650_v13  ;;  %v1655_v35 = vadd.f32 %v2137_v22, %v1202_v49  ;;  %v1194_v12 = vadd.f32 %v1193_v31, %v3031_v34  ;;  %v1589_v5 = vpop.f32.mrf.mxu0  ;;  %v1696_v13 = vld [vmem:[%s2447_s26 + $0xf8] sm:$0xff] }
 0x174   : > { %v2104_v40 = vpop.f32.mrf.mxu1 }
 0x175   : > { %1746 = vst [vmem:[%s2447_s26 + $0x88] sm:$0xff] %v1714_v59  ;;  %v1719_v29 = vadd.f32 %v1687_v36, %v1655_v35  ;;  %v1653_v21 = vadd.f32 %v1586_v33, %v1194_v12  ;;  %v1205_v61 = vadd.f32 %v2104_v40, %v3033_v52  ;;  %v2141_v32 = vpop.f32.mrf.mxu0  ;;  %v1694_v59 = vld [vmem:[%s2447_s26 + $0xe8] sm:$0xff] }
 0x176   : > { %v1196_v42 = vpop.f32.mrf.mxu1 }
 0x177   : > { %1751 = vst [vmem:[%s2447_s26 + $0xb0] sm:$0xff] %v1719_v29  ;;  %v1717_v23 = vadd.f32 %v1685_v9, %v1653_v21  ;;  %v1656_v39 = vadd.f32 %v2138_v16, %v1205_v61  ;;  %v1197_v34 = vadd.f32 %v1196_v42, %v3037_v2  ;;  %v1602_v10 = vpop.f32.mrf.mxu0 }
 0x178   : > { %v2107_v11 = vpop.f32.mrf.mxu1 }
 0x179   : > { %1749 = vst [vmem:[%s2447_s26 + $0xa0] sm:$0xff] %v1717_v23  ;;  %v1720_v26 = vadd.f32 %v1688_v53, %v1656_v39  ;;  %v1654_v24 = vadd.f32 %v1589_v5, %v1197_v34  ;;  %v1218_v52 = vadd.f32 %v2107_v11, %v3041_v3  ;;  %v2142_v41 = vpop.f32.mrf.mxu0 }
 0x17a   : > { %v1209_v47 = vpop.f32.mrf.mxu1 }
 0x17b   : > { %1752 = vst [vmem:[%s2447_s26 + $0xb8] sm:$0xff] %v1720_v26  ;;  %v1718_v51 = vadd.f32 %v1686_v17, %v1654_v24  ;;  %v1659_v4 = vadd.f32 %v2141_v32, %v1218_v52  ;;  %v1210_v2 = vadd.f32 %v1209_v47, %v3045_v56  ;;  %v1605_v60 = vpop.f32.mrf.mxu0 }
 0x17c   : > { %v2108_v48 = vpop.f32.mrf.mxu1 }
 0x17d   : > { %1750 = vst [vmem:[%s2447_s26 + $0xa8] sm:$0xff] %v1718_v51  ;;  %v1723_v63 = vadd.f32 %v1691_v58, %v1659_v4  ;;  %v1657_v55 = vadd.f32 %v1602_v10, %v1210_v2  ;;  %v1221_v3 = vadd.f32 %v2108_v48, %v3049_v57  ;;  %v2145_v44 = vpop.f32.mrf.mxu0 }
 0x17e   : > { %v1212_v0 = vpop.f32.mrf.mxu1 }
 0x17f   : > { %1755 = vst [vmem:[%s2447_s26 + $0xd0] sm:$0xff] %v1723_v63  ;;  %v1721_v50 = vadd.f32 %v1689_v37, %v1657_v55  ;;  %v1660_v6 = vadd.f32 %v2142_v41, %v1221_v3  ;;  %v1213_v56 = vadd.f32 %v1212_v0, %v3053_v8  ;;  %v1618_v28 = vpop.f32.mrf.mxu0 }
 0x180   : > { %v2111_v25 = vpop.f32.mrf.mxu1 }
 0x181   : > { %1753 = vst [vmem:[%s2447_s26 + $0xc0] sm:$0xff] %v1721_v50  ;;  %v1724_v46 = vadd.f32 %v1692_v45, %v1660_v6  ;;  %v1658_v22 = vadd.f32 %v1605_v60, %v1213_v56  ;;  %v1234_v57 = vadd.f32 %v2111_v25, %v3059_v38  ;;  %v2146_v54 = vpop.f32.mrf.mxu0 }
 0x182   : > { %v1225_v19 = vpop.f32.mrf.mxu1 }
 0x183   : > { %1756 = vst [vmem:[%s2447_s26 + $0xd8] sm:$0xff] %v1724_v46  ;;  %v1722_v14 = vadd.f32 %v1690_v7, %v1658_v22  ;;  %v1663_v15 = vadd.f32 %v2145_v44, %v1234_v57  ;;  %v1226_v8 = vadd.f32 %v1225_v19, %v3063_v27  ;;  %v1621_v31 = vpop.f32.mrf.mxu0 }
 0x184   : > { %v2112_v33 = vpop.f32.mrf.mxu1 }
 0x185   : > { %1754 = vst [vmem:[%s2447_s26 + $0xc8] sm:$0xff] %v1722_v14  ;;  %v1727_v30 = vadd.f32 %v1695_v1, %v1663_v15  ;;  %v1661_v20 = vadd.f32 %v1618_v28, %v1226_v8  ;;  %v1237_v38 = vadd.f32 %v2112_v33, %v3067_v62 }
 0x186   : > { %v1228_v49 = vpop.f32.mrf.mxu1 }
 0x187   : > { %1759 = vst [vmem:[%s2447_s26 + $0xf0] sm:$0xff] %v1727_v30  ;;  %v1725_v16 = vadd.f32 %v1693_v43, %v1661_v20  ;;  %v1664_v36 = vadd.f32 %v2146_v54, %v1237_v38  ;;  %v1229_v27 = vadd.f32 %v1228_v49, %v3069_v18 }
 0x189   : > { %1757 = vst [vmem:[%s2447_s26 + $0xe0] sm:$0xff] %v1725_v16  ;;  %v1728_v35 = vadd.f32 %v1696_v13, %v1664_v36  ;;  %v1662_v12 = vadd.f32 %v1621_v31, %v1229_v27 }
 0x18b   : > { %1760 = vst [vmem:[%s2447_s26 + $0xf8] sm:$0xff] %v1728_v35  ;;  %v1726_v62 = vadd.f32 %v1694_v59, %v1662_v12 }
 0x18d   : > { %1758 = vst [vmem:[%s2447_s26 + $0xe8] sm:$0xff] %v1726_v62 }
 0x18e   : > { %2257 = shalt.err (!%p2254_p8)
}
 0x18f   : > { %s2258_s21 = scalar_lea.hbm %s3163_s7, 4096  ;;  %s2262_s29 = scalar_lea.hbm %s3225_s3, 8192 }
 0x190   : > { %p2259_p10 = scmp.ne.s32.totalorder %s3163_s7, %s2258_s21  ;;  %p2263_p13 = scmp.lt.s32.totalorder %s3163_s7, %s3225_s3 }
 0x191   : > { %p2264_p0 = scmp.lt.s32.totalorder %s2262_s29, %s2258_s21 }
 0x192   : > { %p2260_p11 = pnand %p2259_p10, %p2410_p3 }
 0x193   : > { %p2265_p1 = por %p2264_p0, %p2263_p13 }
 0x194   : > { %p2261_p12 = pneg %p2260_p11 }
 0x196   : > { %p2266_p2 = pnand %p2265_p1, %p2261_p12 }
 0x198   : > { %2269 = shalt.err (!%p2266_p2)
}
 0x199   : > { %s2339_s5 = smov 128   ;;  %s2340_s6 = smov 8  }
 0x19a   : > { %2155 = dma.vmem_to_hbm [thread:$0]  (%p2410_p3), %s3165_s4, 4096, %s3163_s7, %s3171_s8, %s2339_s5, %s2339_s5, %s2340_s6  }
 0x19b PF: > { %p2161_p4 = scmp.ge.s32.totalorder %s2336_s19, 2  ;;  %s1790_s16 = sand.u32 1, %s2308_s12  }
 0x19c   : > { %s1791_s9 = scalar_lea.sflag [#allocation3], %s1790_s16 }
 0x19d   : > { %p2158_p5 = pnand %p2161_p4, %p2420_p9 }
 0x19f   : > { %p2159_p6 = pneg %p2158_p5 }
 0x1a1   : > { %2303 = dma.done.wait (%p2159_p6), %s1791_s9, 4096  }
 0x1a2   : > { %2305 = vsyncadd (%p2159_p6), %s1791_s9, 4294963200  ;;  %s16_s19 = sadd.s32 1, %s2336_s19   ;;  %s3267_s12 = smov %s2312_s13 }
 0x1a3   : > { %p13_p7 = scmp.ge.s32.totalorder %s16_s19, 8   ;;  %s3268_s13 = smov %s2316_s14 }
 0x1a4   : > { %s3269_s14 = smov %s2428_s28  ;;  %s3270_s15 = smov %s2328_s17 }
 0x1a5   : > { %s3271_s16 = smov %s2332_s18  ;;  %s3272_s17 = smov %s3275_s22 }
 0x1a6   : > { %s3273_s18 = smov %s3279_s23  ;;  %15 = sbr.rel (!%p13_p7) target bundleno = 5 (0x5), region = 77 }
 0x1ab   :  { %1796 = vsyncpa [#allocation3], 1 }
 0x1ac   :  { %1798 = vsyncpa [#allocation3 + $0x1], 1 }

</bundles_post_ra>
